<compile_context>
chip_gen: v5e
topology: v5e:2x2
jax: 0.10.0
libtpu: 0.0.40
codegen_flags: <defaults>
</compile_context>

<pallas_src>
import functools

import jax
import jax.numpy as jnp
from jax import lax
from jax.experimental import pallas as pl
from jax.experimental.pallas import tpu as pltpu


# Safe on all generations: < v7x 64 MiB physical, well under v5e/v6e 128 MiB.
_VMEM_LIMIT_BYTES = 48 * 1024 * 1024
_ROW_TILE_BUDGET_BYTES = 4 * 1024 * 1024  # per-buffer target; keeps pipelining alive on v7x


def _largest_divisor_at_most(n, t):
    t = max(1, min(n, int(t)))
    while n % t:
        t -= 1
    return t


def _pick_row_tile(H, W, c_in, c_out, dtype):
    bpe = jnp.dtype(dtype).itemsize
    per_row = W * (c_in + c_out) * bpe * 2  # in + out, double-buffered
    return _largest_divisor_at_most(H, _ROW_TILE_BUDGET_BYTES // max(1, per_row))


# ----------------------------------------------------------------------------
# Kernel 1: ConvTranspose2d(kernel=2, stride=2) as row-tiled MXU matmuls.
# Each input pixel yields an independent 2x2 output patch:
#   out[n, 2i+di, 2j+dj, oc] = sum_c x[n,i,j,c] * W[c, oc, di, dj] + b[oc]
# The kernel does one matmul per di (K=Cin, N=2*Cup, lanes ordered (dj, oc)) and
# writes into an output laid out as (N, H, 2, W, 2*Cup); the final
# (N, 2H, 2W, Cup) view is a pure reshape (no transpose / HBM shuffle).
# ----------------------------------------------------------------------------
def _upsample_kernel(x_ref, w_ref, b_ref, o_ref):
    # x_ref: (1, th, W, Cin)   w_ref: (2, Cin, 2*Cup)   b_ref: (1, 2*Cup) f32
    # o_ref: (1, th, 2, W, 2*Cup)
    th, W, Cin = x_ref.shape[1], x_ref.shape[2], x_ref.shape[3]
    x2d = x_ref[0].reshape(th * W, Cin)
    for di in range(2):
        y = jnp.dot(x2d, w_ref[di], preferred_element_type=jnp.float32)
        y = y + b_ref[...]                                  # (th*W, 2*Cup) f32
        o_ref[0, :, di, :, :] = y.reshape(th, W, y.shape[-1]).astype(o_ref.dtype)


def conv_transpose_2x2_s2(x_nhwc, w_pt, b_pt, *, compute_dtype=jnp.bfloat16,
                          row_tile=None):
    """x_nhwc: [N,H,W,Cin]; w_pt: [Cin,Cup,2,2] (PyTorch layout); b_pt: [Cup]."""
    N, H, W, Cin = x_nhwc.shape
    Cup = w_pt.shape[1]
    # (Cin, Cup, di, dj) -> (di, Cin, dj, Cup) -> (2, Cin, 2*Cup); lanes = (dj, oc)
    w_k = jnp.transpose(w_pt, (2, 0, 3, 1)).reshape(2, Cin, 2 * Cup).astype(compute_dtype)
    b_row = jnp.tile(b_pt, (2,)).reshape(1, 2 * Cup).astype(jnp.float32)
    x = x_nhwc.astype(compute_dtype)

    if row_tile is None:
        th = _pick_row_tile(H, W, Cin, 4 * Cup, compute_dtype)
    else:
        th = _largest_divisor_at_most(H, row_tile)

    out = pl.pallas_call(
        _upsample_kernel,
        out_shape=jax.ShapeDtypeStruct((N, H, 2, W, 2 * Cup), compute_dtype),
        grid=(N, H // th),
        in_specs=[
            pl.BlockSpec((1, th, W, Cin), lambda n, h: (n, h, 0, 0)),
            pl.BlockSpec((2, Cin, 2 * Cup), lambda n, h: (0, 0, 0)),
            pl.BlockSpec((1, 2 * Cup), lambda n, h: (0, 0)),
        ],
        out_specs=pl.BlockSpec((1, th, 2, W, 2 * Cup), lambda n, h: (n, h, 0, 0, 0)),
        compiler_params=pltpu.CompilerParams(
            dimension_semantics=("parallel", "parallel"),
            vmem_limit_bytes=_VMEM_LIMIT_BYTES),
    )(x, w_k, b_row)
    # (N, H, 2, W, 2*Cup) -> (N, 2H, 2W, Cup): row-major regrouping only.
    return out.reshape(N, 2 * H, 2 * W, Cup)


# ----------------------------------------------------------------------------
# Kernel 2: fused [optional channel-concat] + Conv3x3(pad=1, no bias) + BN + ReLU.
# Grid (N, H//th).  The padding=1 halo is built in VMEM from one extra top row
# and one extra bottom row (clamped index_maps, zero-masked at the boundary);
# the W halo is two in-kernel zero columns.  Conv = 3 matmuls with K = 3*Cin.
# ----------------------------------------------------------------------------
def _masked_row(row, zero_it):
    keep = (1.0 - zero_it.astype(jnp.float32)).astype(row.dtype)   # scalar
    return row * keep


def _pad_tile(main, top, bot, zero_top, zero_bot):
    # main: (th, W, C); top/bot: (1, W, C)  ->  (th+2, W+2, C) zero-padded halo tile
    top = _masked_row(top, zero_top)
    bot = _masked_row(bot, zero_bot)
    x = jnp.concatenate([top, main, bot], axis=0)                  # (th+2, W, C)
    zcol = jnp.zeros((x.shape[0], 1, x.shape[2]), x.dtype)
    return jnp.concatenate([zcol, x, zcol], axis=1)                # (th+2, W+2, C)


def _conv3x3_bn_relu(xp, w_ref, s_ref, b_ref, th, W):
    # xp: (th+2, W+2, C); w_ref: (3, 3*C, Cout); s_ref/b_ref: (1, Cout) f32
    Cout = w_ref.shape[-1]
    acc = None
    for dh in range(3):
        slab = xp[dh:dh + th, :, :]                                # (th, W+2, C)
        # Fold the 3 dw taps into the contraction: lanes ordered (dw, c) -> K = 3*C.
        tap = jnp.concatenate(
            [slab[:, 0:W, :], slab[:, 1:W + 1, :], slab[:, 2:W + 2, :]], axis=-1)
        part = jnp.dot(tap.reshape(th * W, tap.shape[-1]), w_ref[dh],
                       preferred_element_type=jnp.float32)         # (th*W, Cout)
        acc = part if acc is None else acc + part                  # init from first tap
    y = acc * s_ref[...] + b_ref[...]
    y = jnp.maximum(y, 0.0)
    return y.reshape(th, W, Cout)


def _conv_cat_kernel(x2m, x2t, x2b, x1m, x1t, x1b, w_ref, s_ref, b_ref, o_ref):
    th, W = o_ref.shape[1], o_ref.shape[2]
    zt = pl.program_id(1) == 0
    zb = pl.program_id(1) == pl.num_programs(1) - 1
    xp2 = _pad_tile(x2m[0], x2t[0], x2b[0], zt, zb)
    xp1 = _pad_tile(x1m[0], x1t[0], x1b[0], zt, zb)
    xp = jnp.concatenate([xp2, xp1], axis=-1)      # fused torch.cat (VMEM, not HBM)
    o_ref[0] = _conv3x3_bn_relu(xp, w_ref, s_ref, b_ref, th, W).astype(o_ref.dtype)


def _conv_kernel(xm, xt, xb, w_ref, s_ref, b_ref, o_ref):
    th, W = o_ref.shape[1], o_ref.shape[2]
    zt = pl.program_id(1) == 0
    zb = pl.program_id(1) == pl.num_programs(1) - 1
    xp = _pad_tile(xm[0], xt[0], xb[0], zt, zb)
    o_ref[0] = _conv3x3_bn_relu(xp, w_ref, s_ref, b_ref, th, W).astype(o_ref.dtype)


def _fold_bn(gamma, beta, mean, var, eps):
    scale = gamma / jnp.sqrt(var + eps)
    bias = beta - mean * scale
    C = gamma.shape[0]
    return (scale.reshape(1, C).astype(jnp.float32),
            bias.reshape(1, C).astype(jnp.float32))


def _halo_specs(H, W, C, th):
    main = pl.BlockSpec((1, th, W, C), lambda n, h: (n, h, 0, 0))
    top = pl.BlockSpec((1, 1, W, C),
                       lambda n, h: (n, jnp.maximum(h * th - 1, 0), 0, 0))
    bot = pl.BlockSpec((1, 1, W, C),
                       lambda n, h: (n, jnp.minimum(h * th + th, H - 1), 0, 0))
    return [main, top, bot]


def _shared_specs(Cin, Cout):
    return [
        pl.BlockSpec((3, 3 * Cin, Cout), lambda n, h: (0, 0, 0)),
        pl.BlockSpec((1, Cout), lambda n, h: (0, 0)),
        pl.BlockSpec((1, Cout), lambda n, h: (0, 0)),
    ]


def conv_bn_relu(x, w_hwio, gamma, beta, mean, var, *, eps=1e-5,
                 compute_dtype=jnp.bfloat16, out_dtype=None, row_tile=None):
    """x: [N,H,W,Cin]; w_hwio: [3,3,Cin,Cout]; BN params: [Cout]."""
    N, H, W, Cin = x.shape
    Cout = w_hwio.shape[-1]
    out_dtype = out_dtype or compute_dtype
    scale, bias = _fold_bn(gamma, beta, mean, var, eps)
    w_k = w_hwio.reshape(3, 3 * Cin, Cout).astype(compute_dtype)
    x = x.astype(compute_dtype)

    th = (_pick_row_tile(H, W, Cin, Cout, compute_dtype) if row_tile is None
          else _largest_divisor_at_most(H, row_tile))

    return pl.pallas_call(
        _conv_kernel,
        out_shape=jax.ShapeDtypeStruct((N, H, W, Cout), out_dtype),
        grid=(N, H // th),
        in_specs=_halo_specs(H, W, Cin, th) + _shared_specs(Cin, Cout),
        out_specs=pl.BlockSpec((1, th, W, Cout), lambda n, h: (n, h, 0, 0)),
        compiler_params=pltpu.CompilerParams(
            dimension_semantics=("parallel", "parallel"),
            vmem_limit_bytes=_VMEM_LIMIT_BYTES),
    )(x, x, x, w_k, scale, bias)


def conv_bn_relu_cat(xa, xb, w_hwio, gamma, beta, mean, var, *, eps=1e-5,
                     compute_dtype=jnp.bfloat16, out_dtype=None, row_tile=None):
    """Fused torch.cat([xa, xb], channel) + Conv3x3 + BN + ReLU (concat stays in VMEM)."""
    N, H, W, Ca = xa.shape
    Cb = xb.shape[-1]
    Cin = Ca + Cb
    Cout = w_hwio.shape[-1]
    out_dtype = out_dtype or compute_dtype
    scale, bias = _fold_bn(gamma, beta, mean, var, eps)
    w_k = w_hwio.reshape(3, 3 * Cin, Cout).astype(compute_dtype)
    xa = xa.astype(compute_dtype)
    xb = xb.astype(compute_dtype)

    th = (_pick_row_tile(H, W, Cin, Cout, compute_dtype) if row_tile is None
          else _largest_divisor_at_most(H, row_tile))

    return pl.pallas_call(
        _conv_cat_kernel,
        out_shape=jax.ShapeDtypeStruct((N, H, W, Cout), out_dtype),
        grid=(N, H // th),
        in_specs=(_halo_specs(H, W, Ca, th) + _halo_specs(H, W, Cb, th)
                  + _shared_specs(Cin, Cout)),
        out_specs=pl.BlockSpec((1, th, W, Cout), lambda n, h: (n, h, 0, 0)),
        compiler_params=pltpu.CompilerParams(
            dimension_semantics=("parallel", "parallel"),
            vmem_limit_bytes=_VMEM_LIMIT_BYTES),
    )(xa, xa, xa, xb, xb, xb, w_k, scale, bias)


# ----------------------------------------------------------------------------
# Full UNetDecoder forward.
# ----------------------------------------------------------------------------
def unet_decoder_forward(x1_nchw, x2_nchw, params, *, compute_dtype=jnp.bfloat16,
                         up_row_tile=None, conv_row_tile=None):
    x1 = jnp.transpose(x1_nchw, (0, 2, 3, 1))
    x2 = jnp.transpose(x2_nchw, (0, 2, 3, 1))

    # up = ConvTranspose2d(in_channels, in_channels//2, 2, stride=2)
    x1_up = conv_transpose_2x2_s2(x1, params["up_w"], params["up_b"],
                                  compute_dtype=compute_dtype, row_tile=up_row_tile)

    # torch.cat([x2, x1], dim=1) fused into the first ConvBnReLU (no HBM concat).
    y = conv_bn_relu_cat(x2, x1_up, params["w1"], params["g1"], params["b1"],
                         params["m1"], params["v1"],
                         compute_dtype=compute_dtype, row_tile=conv_row_tile)
    # TODO(synk): optionally fuse the two ConvBnReLU stages into one pallas_call
    # (per-generation switch, needs an extra-halo tile) to drop the intermediate
    # HBM round trip when the tile fits VMEM.
    y = conv_bn_relu(y, params["w2"], params["g2"], params["b2"],
                     params["m2"], params["v2"],
                     compute_dtype=compute_dtype, out_dtype=jnp.float32,
                     row_tile=conv_row_tile)

    return jnp.transpose(y, (0, 3, 1, 2))   # NHWC -> NCHW (match PyTorch)


# ----------------------------------------------------------------------------
# Pure-JAX f32 reference (lax convolutions) for validation.
# ----------------------------------------------------------------------------
def reference_forward(x1_nchw, x2_nchw, params):
    x1 = jnp.transpose(x1_nchw, (0, 2, 3, 1)).astype(jnp.float32)
    x2 = jnp.transpose(x2_nchw, (0, 2, 3, 1)).astype(jnp.float32)

    N, H, W, _ = x1.shape
    Cup = params["up_w"].shape[1]
    patches = jnp.einsum("nhwc,codx->nhwdxo", x1, params["up_w"]) + params["up_b"]
    x1_up = jnp.transpose(patches, (0, 1, 3, 2, 4, 5)).reshape(N, 2 * H, 2 * W, Cup)

    x = jnp.concatenate([x2, x1_up], axis=-1)

    def cbr(x, w_hwio, g, b, m, v, eps=1e-5):
        y = lax.conv_general_dilated(
            x, w_hwio, window_strides=(1, 1), padding="SAME",
            dimension_numbers=("NHWC", "HWIO", "NHWC"))
        s = g / jnp.sqrt(v + eps)
        y = y * s + (b - m * s)
        return jnp.maximum(y, 0.0)

    y = cbr(x, params["w1"], params["g1"], params["b1"], params["m1"], params["v1"])
    y = cbr(y, params["w2"], params["g2"], params["b2"], params["m2"], params["v2"])
    return jnp.transpose(y, (0, 3, 1, 2))


def make_params(key, in_channels, out_channels):
    ks = jax.random.split(key, 8)
    cin, cout = in_channels, out_channels
    cup = cin // 2

    # ConvTranspose2d weight: [in_channels, out_channels, kH, kW]
    up_w = jax.random.normal(ks[0], (cin, cup, 2, 2), jnp.float32) * 0.1
    up_b = jax.random.normal(ks[1], (cup,), jnp.float32) * 0.1

    # Conv2d(OIHW) -> store as HWIO for the NHWC kernels
    w1_oihw = jax.random.normal(ks[2], (cout, cin, 3, 3), jnp.float32) * 0.1
    w2_oihw = jax.random.normal(ks[3], (cout, cout, 3, 3), jnp.float32) * 0.1
    w1 = jnp.transpose(w1_oihw, (2, 3, 1, 0))
    w2 = jnp.transpose(w2_oihw, (2, 3, 1, 0))

    g1 = 1.0 + 0.05 * jax.random.normal(ks[4], (cout,), jnp.float32)
    b1 = 0.05 * jax.random.normal(ks[5], (cout,), jnp.float32)
    m1 = 0.02 * jnp.arange(cout, dtype=jnp.float32)
    v1 = 1.0 + 0.01 * jnp.arange(cout, dtype=jnp.float32)

    g2 = 1.0 + 0.05 * jax.random.normal(ks[6], (cout,), jnp.float32)
    b2 = 0.05 * jax.random.normal(ks[7], (cout,), jnp.float32)
    m2 = -0.02 * jnp.arange(cout, dtype=jnp.float32)
    v2 = 1.0 + 0.02 * jnp.arange(cout, dtype=jnp.float32)

    return dict(up_w=up_w, up_b=up_b, w1=w1, g1=g1, b1=b1, m1=m1, v1=v1,
                w2=w2, g2=g2, b2=b2, m2=m2, v2=v2)


if __name__ == "__main__":
    in_channels, out_channels = 8, 4
    N, H1, W1 = 2, 8, 8                       # x1 (coarse) spatial
    H2, W2 = 2 * H1, 2 * W1                   # x2 (skip) spatial

    key = jax.random.PRNGKey(0)
    k1, k2, kp = jax.random.split(key, 3)
    x1 = jax.random.normal(k1, (N, in_channels, H1, W1), jnp.float32)       # NCHW
    x2 = jax.random.normal(k2, (N, in_channels // 2, H2, W2), jnp.float32)  # NCHW
    params = make_params(kp, in_channels, out_channels)

    ref = jax.block_until_ready(reference_forward(x1, x2, params))

    # 1) f32 compute path with multi-tile grids (exercises the in-kernel halo logic).
    fwd_f32 = jax.jit(functools.partial(unet_decoder_forward,
                                        compute_dtype=jnp.float32,
                                        up_row_tile=4, conv_row_tile=4))
    out_f32 = jax.block_until_ready(fwd_f32(x1, x2, params))
    assert out_f32.shape == (N, out_channels, H2, W2), out_f32.shape
    assert jnp.allclose(out_f32, ref, atol=2e-3, rtol=2e-3), \
        float(jnp.max(jnp.abs(out_f32 - ref)))

    # 2) bf16 MXU operands (f32 accumulation) — looser tolerance vs f32 reference.
    fwd_bf16 = jax.jit(functools.partial(unet_decoder_forward,
                                         compute_dtype=jnp.bfloat16,
                                         up_row_tile=4, conv_row_tile=8))
    out_bf16 = jax.block_until_ready(fwd_bf16(x1, x2, params))
    assert out_bf16.shape == (N, out_channels, H2, W2), out_bf16.shape
    assert jnp.allclose(out_bf16, ref, atol=6e-2, rtol=6e-2), \
        float(jnp.max(jnp.abs(out_bf16 - ref)))

    print("KERNEL_OK")
</pallas_src>

<mosaic_0001>
module attributes {stable_mosaic.version = 11 : i64} {
  func.func @_upsample_kernel(%arg0: i32, %arg1: i32, %arg2: memref<1x4x8x8xf32, #tpu.memory_space<vmem>>, %arg3: memref<2x8x8xf32, #tpu.memory_space<vmem>>, %arg4: memref<1x8xf32, #tpu.memory_space<vmem>>, %arg5: memref<1x4x2x8x8xf32, #tpu.memory_space<vmem>>) attributes {dimension_semantics = [#tpu.dimension_semantics<parallel>, #tpu.dimension_semantics<parallel>], iteration_bounds = array<i64: 2, 2>, scalar_prefetch = 0 : i64, scratch_operands = 0 : i64, tpu.core_type = #tpu.core_type<tc>, window_params = [{transform_indices = @transform_0, window_bounds = array<i64: 1, 4, 8, 8>}, {pipeline_mode = #tpu.pipeline_mode<synchronous>, transform_indices = @transform_1, window_bounds = array<i64: 2, 8, 8>}, {pipeline_mode = #tpu.pipeline_mode<synchronous>, transform_indices = @transform_2, window_bounds = array<i64: 1, 8>}, {transform_indices = @transform_3, window_bounds = array<i64: 1, 4, 2, 8, 8>}]} {
    %c0 = arith.constant 0 : index
    %c0_0 = arith.constant 0 : index
    %c0_1 = arith.constant 0 : index
    %c0_2 = arith.constant 0 : index
    %0 = vector.load %arg2[%c0, %c0_0, %c0_1, %c0_2] : memref<1x4x8x8xf32, #tpu.memory_space<vmem>>, vector<1x4x8x8xf32>
    %1 = vector.shape_cast %0 : vector<1x4x8x8xf32> to vector<4x8x8xf32>
    %2 = vector.shape_cast %1 : vector<4x8x8xf32> to vector<32x8xf32>
    %c0_3 = arith.constant 0 : index
    %c0_4 = arith.constant 0 : index
    %c0_5 = arith.constant 0 : index
    %3 = vector.load %arg3[%c0_3, %c0_4, %c0_5] : memref<2x8x8xf32, #tpu.memory_space<vmem>>, vector<1x8x8xf32>
    %4 = vector.shape_cast %3 : vector<1x8x8xf32> to vector<8x8xf32>
    %cst = arith.constant dense<0.000000e+00> : vector<32x8xf32>
    %5 = tpu.matmul %2, %4, %cst {dimension_numbers = #tpu.dot_dimension_numbers<[1], [0], [0], [1], [0, 0, 1, 1], [], []>} : vector<32x8xf32>, vector<8x8xf32>, vector<32x8xf32> -> vector<32x8xf32>
    %c0_6 = arith.constant 0 : index
    %c0_7 = arith.constant 0 : index
    %6 = vector.load %arg4[%c0_6, %c0_7] : memref<1x8xf32, #tpu.memory_space<vmem>>, vector<1x8xf32>
    %7 = vector.broadcast %6 : vector<1x8xf32> to vector<32x8xf32>
    %8 = arith.addf %5, %7 : vector<32x8xf32>
    %9 = vector.shape_cast %8 : vector<32x8xf32> to vector<4x8x8xf32>
    %c0_8 = arith.constant 0 : index
    %c0_9 = arith.constant 0 : index
    %c0_10 = arith.constant 0 : index
    %c0_11 = arith.constant 0 : index
    %c0_12 = arith.constant 0 : index
    %10 = vector.load %arg5[%c0_8, %c0_9, %c0_10, %c0_11, %c0_12] : memref<1x4x2x8x8xf32, #tpu.memory_space<vmem>>, vector<1x4x1x8x8xf32>
    %11 = vector.shape_cast %10 : vector<1x4x1x8x8xf32> to vector<4x8x8xf32>
    %12 = vector.shape_cast %9 : vector<4x8x8xf32> to vector<1x4x1x8x8xf32>
    tpu.vector_store %arg5[%c0_8, %c0_9, %c0_10, %c0_11, %c0_12], %12 {strides = array<i32>} : memref<1x4x2x8x8xf32, #tpu.memory_space<vmem>>, vector<1x4x1x8x8xf32>,
    %c1 = arith.constant 1 : index
    %c0_13 = arith.constant 0 : index
    %c0_14 = arith.constant 0 : index
    %13 = vector.load %arg3[%c1, %c0_13, %c0_14] : memref<2x8x8xf32, #tpu.memory_space<vmem>>, vector<1x8x8xf32>
    %14 = vector.shape_cast %13 : vector<1x8x8xf32> to vector<8x8xf32>
    %cst_15 = arith.constant dense<0.000000e+00> : vector<32x8xf32>
    %15 = tpu.matmul %2, %14, %cst_15 {dimension_numbers = #tpu.dot_dimension_numbers<[1], [0], [0], [1], [0, 0, 1, 1], [], []>} : vector<32x8xf32>, vector<8x8xf32>, vector<32x8xf32> -> vector<32x8xf32>
    %c0_16 = arith.constant 0 : index
    %c0_17 = arith.constant 0 : index
    %16 = vector.load %arg4[%c0_16, %c0_17] : memref<1x8xf32, #tpu.memory_space<vmem>>, vector<1x8xf32>
    %17 = vector.broadcast %16 : vector<1x8xf32> to vector<32x8xf32>
    %18 = arith.addf %15, %17 : vector<32x8xf32>
    %19 = vector.shape_cast %18 : vector<32x8xf32> to vector<4x8x8xf32>
    %c0_18 = arith.constant 0 : index
    %c0_19 = arith.constant 0 : index
    %c1_20 = arith.constant 1 : index
    %c0_21 = arith.constant 0 : index
    %c0_22 = arith.constant 0 : index
    %20 = vector.load %arg5[%c0_18, %c0_19, %c1_20, %c0_21, %c0_22] : memref<1x4x2x8x8xf32, #tpu.memory_space<vmem>>, vector<1x4x1x8x8xf32>
    %21 = vector.shape_cast %20 : vector<1x4x1x8x8xf32> to vector<4x8x8xf32>
    %22 = vector.shape_cast %19 : vector<4x8x8xf32> to vector<1x4x1x8x8xf32>
    tpu.vector_store %arg5[%c0_18, %c0_19, %c1_20, %c0_21, %c0_22], %22 {strides = array<i32>} : memref<1x4x2x8x8xf32, #tpu.memory_space<vmem>>, vector<1x4x1x8x8xf32>,
    return
  }
  func.func @transform_0(%arg0: i32, %arg1: i32) -> (i32, i32, i32, i32) {
    %c0_i32 = arith.constant 0 : i32
    %c0_i32_0 = arith.constant 0 : i32
    %c0_i32_1 = arith.constant 0 : i32
    return %arg0, %arg1, %c0_i32, %c0_i32_0 : i32, i32, i32, i32
  }
  func.func @transform_1(%arg0: i32, %arg1: i32) -> (i32, i32, i32) {
    %c0_i32 = arith.constant 0 : i32
    %c0_i32_0 = arith.constant 0 : i32
    %c0_i32_1 = arith.constant 0 : i32
    %c0_i32_2 = arith.constant 0 : i32
    return %c0_i32, %c0_i32_0, %c0_i32_1 : i32, i32, i32
  }
  func.func @transform_2(%arg0: i32, %arg1: i32) -> (i32, i32) {
    %c0_i32 = arith.constant 0 : i32
    %c0_i32_0 = arith.constant 0 : i32
    %c0_i32_1 = arith.constant 0 : i32
    return %c0_i32, %c0_i32_0 : i32, i32
  }
  func.func @transform_3(%arg0: i32, %arg1: i32) -> (i32, i32, i32, i32, i32) {
    %c0_i32 = arith.constant 0 : i32
    %c0_i32_0 = arith.constant 0 : i32
    %c0_i32_1 = arith.constant 0 : i32
    %c0_i32_2 = arith.constant 0 : i32
    return %arg0, %arg1, %c0_i32, %c0_i32_0, %c0_i32_1 : i32, i32, i32, i32, i32
  }
}

module attributes {stable_mosaic.version = 11 : i64} {
  func.func @_conv_cat_kernel(%arg0: i32, %arg1: i32, %arg2: memref<1x4x16x4xf32, #tpu.memory_space<vmem>>, %arg3: memref<1x1x16x4xf32, #tpu.memory_space<vmem>>, %arg4: memref<1x1x16x4xf32, #tpu.memory_space<vmem>>, %arg5: memref<1x4x16x4xf32, #tpu.memory_space<vmem>>, %arg6: memref<1x1x16x4xf32, #tpu.memory_space<vmem>>, %arg7: memref<1x1x16x4xf32, #tpu.memory_space<vmem>>, %arg8: memref<3x24x4xf32, #tpu.memory_space<vmem>>, %arg9: memref<1x4xf32, #tpu.memory_space<vmem>>, %arg10: memref<1x4xf32, #tpu.memory_space<vmem>>, %arg11: memref<1x4x16x4xf32, #tpu.memory_space<vmem>>) attributes {dimension_semantics = [#tpu.dimension_semantics<parallel>, #tpu.dimension_semantics<parallel>], iteration_bounds = array<i64: 2, 4>, scalar_prefetch = 0 : i64, scratch_operands = 0 : i64, tpu.core_type = #tpu.core_type<tc>, window_params = [{transform_indices = @transform_0, window_bounds = array<i64: 1, 4, 16, 4>}, {transform_indices = @transform_1, window_bounds = array<i64: 1, 1, 16, 4>}, {transform_indices = @transform_2, window_bounds = array<i64: 1, 1, 16, 4>}, {transform_indices = @transform_3, window_bounds = array<i64: 1, 4, 16, 4>}, {transform_indices = @transform_4, window_bounds = array<i64: 1, 1, 16, 4>}, {transform_indices = @transform_5, window_bounds = array<i64: 1, 1, 16, 4>}, {pipeline_mode = #tpu.pipeline_mode<synchronous>, transform_indices = @transform_6, window_bounds = array<i64: 3, 24, 4>}, {pipeline_mode = #tpu.pipeline_mode<synchronous>, transform_indices = @transform_7, window_bounds = array<i64: 1, 4>}, {pipeline_mode = #tpu.pipeline_mode<synchronous>, transform_indices = @transform_8, window_bounds = array<i64: 1, 4>}, {transform_indices = @transform_9, window_bounds = array<i64: 1, 4, 16, 4>}]} {
    %c0_i32 = arith.constant 0 : i32
    %0 = arith.cmpi eq, %arg1, %c0_i32 : i32
    %c3_i32 = arith.constant 3 : i32
    %1 = arith.cmpi eq, %arg1, %c3_i32 : i32
    %c0 = arith.constant 0 : index
    %c0_0 = arith.constant 0 : index
    %c0_1 = arith.constant 0 : index
    %c0_2 = arith.constant 0 : index
    %2 = vector.load %arg2[%c0, %c0_0, %c0_1, %c0_2] : memref<1x4x16x4xf32, #tpu.memory_space<vmem>>, vector<1x4x16x4xf32>
    %3 = vector.shape_cast %2 : vector<1x4x16x4xf32> to vector<4x16x4xf32>
    %c0_3 = arith.constant 0 : index
    %c0_4 = arith.constant 0 : index
    %c0_5 = arith.constant 0 : index
    %c0_6 = arith.constant 0 : index
    %4 = vector.load %arg3[%c0_3, %c0_4, %c0_5, %c0_6] : memref<1x1x16x4xf32, #tpu.memory_space<vmem>>, vector<1x1x16x4xf32>
    %5 = vector.shape_cast %4 : vector<1x1x16x4xf32> to vector<1x16x4xf32>
    %c0_7 = arith.constant 0 : index
    %c0_8 = arith.constant 0 : index
    %c0_9 = arith.constant 0 : index
    %c0_10 = arith.constant 0 : index
    %6 = vector.load %arg4[%c0_7, %c0_8, %c0_9, %c0_10] : memref<1x1x16x4xf32, #tpu.memory_space<vmem>>, vector<1x1x16x4xf32>
    %7 = vector.shape_cast %6 : vector<1x1x16x4xf32> to vector<1x16x4xf32>
    %8 = arith.extui %0 : i1 to i32
    %9 = arith.sitofp %8 : i32 to f32
    %cst = arith.constant 1.000000e+00 : f32
    %10 = arith.subf %cst, %9 : f32
    %11 = vector.broadcast %10 : f32 to vector<1x16x4xf32>
    %12 = arith.mulf %5, %11 : vector<1x16x4xf32>
    %13 = arith.extui %1 : i1 to i32
    %14 = arith.sitofp %13 : i32 to f32
    %cst_11 = arith.constant 1.000000e+00 : f32
    %15 = arith.subf %cst_11, %14 : f32
    %16 = vector.broadcast %15 : f32 to vector<1x16x4xf32>
    %17 = arith.mulf %7, %16 : vector<1x16x4xf32>
    %18 = tpu.concatenate %12, %3, %17 in 0 : vector<1x16x4xf32>, vector<4x16x4xf32>, vector<1x16x4xf32> -> vector<6x16x4xf32>
    %cst_12 = arith.constant 0.000000e+00 : f32
    %19 = vector.broadcast %cst_12 : f32 to vector<6x1x4xf32>
    %20 = tpu.concatenate %19, %18, %19 in 1 : vector<6x1x4xf32>, vector<6x16x4xf32>, vector<6x1x4xf32> -> vector<6x18x4xf32>
    %c0_13 = arith.constant 0 : index
    %c0_14 = arith.constant 0 : index
    %c0_15 = arith.constant 0 : index
    %c0_16 = arith.constant 0 : index
    %21 = vector.load %arg5[%c0_13, %c0_14, %c0_15, %c0_16] : memref<1x4x16x4xf32, #tpu.memory_space<vmem>>, vector<1x4x16x4xf32>
    %22 = vector.shape_cast %21 : vector<1x4x16x4xf32> to vector<4x16x4xf32>
    %c0_17 = arith.constant 0 : index
    %c0_18 = arith.constant 0 : index
    %c0_19 = arith.constant 0 : index
    %c0_20 = arith.constant 0 : index
    %23 = vector.load %arg6[%c0_17, %c0_18, %c0_19, %c0_20] : memref<1x1x16x4xf32, #tpu.memory_space<vmem>>, vector<1x1x16x4xf32>
    %24 = vector.shape_cast %23 : vector<1x1x16x4xf32> to vector<1x16x4xf32>
    %c0_21 = arith.constant 0 : index
    %c0_22 = arith.constant 0 : index
    %c0_23 = arith.constant 0 : index
    %c0_24 = arith.constant 0 : index
    %25 = vector.load %arg7[%c0_21, %c0_22, %c0_23, %c0_24] : memref<1x1x16x4xf32, #tpu.memory_space<vmem>>, vector<1x1x16x4xf32>
    %26 = vector.shape_cast %25 : vector<1x1x16x4xf32> to vector<1x16x4xf32>
    %27 = arith.extui %0 : i1 to i32
    %28 = arith.sitofp %27 : i32 to f32
    %cst_25 = arith.constant 1.000000e+00 : f32
    %29 = arith.subf %cst_25, %28 : f32
    %30 = vector.broadcast %29 : f32 to vector<1x16x4xf32>
    %31 = arith.mulf %24, %30 : vector<1x16x4xf32>
    %32 = arith.extui %1 : i1 to i32
    %33 = arith.sitofp %32 : i32 to f32
    %cst_26 = arith.constant 1.000000e+00 : f32
    %34 = arith.subf %cst_26, %33 : f32
    %35 = vector.broadcast %34 : f32 to vector<1x16x4xf32>
    %36 = arith.mulf %26, %35 : vector<1x16x4xf32>
    %37 = tpu.concatenate %31, %22, %36 in 0 : vector<1x16x4xf32>, vector<4x16x4xf32>, vector<1x16x4xf32> -> vector<6x16x4xf32>
    %cst_27 = arith.constant 0.000000e+00 : f32
    %38 = vector.broadcast %cst_27 : f32 to vector<6x1x4xf32>
    %39 = tpu.concatenate %38, %37, %38 in 1 : vector<6x1x4xf32>, vector<6x16x4xf32>, vector<6x1x4xf32> -> vector<6x18x4xf32>
    %40 = tpu.concatenate %20, %39 in 2 : vector<6x18x4xf32>, vector<6x18x4xf32> -> vector<6x18x8xf32>
    %41 = vector.extract_strided_slice %40 {offsets = [0, 0, 0], sizes = [4, 18, 8], strides = [1, 1, 1]} : vector<6x18x8xf32> to vector<4x18x8xf32>
    %42 = vector.extract_strided_slice %41 {offsets = [0, 0, 0], sizes = [4, 16, 8], strides = [1, 1, 1]} : vector<4x18x8xf32> to vector<4x16x8xf32>
    %43 = vector.extract_strided_slice %41 {offsets = [0, 1, 0], sizes = [4, 16, 8], strides = [1, 1, 1]} : vector<4x18x8xf32> to vector<4x16x8xf32>
    %44 = vector.extract_strided_slice %41 {offsets = [0, 2, 0], sizes = [4, 16, 8], strides = [1, 1, 1]} : vector<4x18x8xf32> to vector<4x16x8xf32>
    %45 = tpu.concatenate %42, %43, %44 in 2 : vector<4x16x8xf32>, vector<4x16x8xf32>, vector<4x16x8xf32> -> vector<4x16x24xf32>
    %46 = vector.shape_cast %45 : vector<4x16x24xf32> to vector<64x24xf32>
    %c0_28 = arith.constant 0 : index
    %c0_29 = arith.constant 0 : index
    %c0_30 = arith.constant 0 : index
    %47 = vector.load %arg8[%c0_28, %c0_29, %c0_30] : memref<3x24x4xf32, #tpu.memory_space<vmem>>, vector<1x24x4xf32>
    %48 = vector.shape_cast %47 : vector<1x24x4xf32> to vector<24x4xf32>
    %cst_31 = arith.constant dense<0.000000e+00> : vector<64x4xf32>
    %49 = tpu.matmul %46, %48, %cst_31 {dimension_numbers = #tpu.dot_dimension_numbers<[1], [0], [0], [1], [0, 0, 1, 1], [], []>} : vector<64x24xf32>, vector<24x4xf32>, vector<64x4xf32> -> vector<64x4xf32>
    %50 = vector.extract_strided_slice %40 {offsets = [1, 0, 0], sizes = [4, 18, 8], strides = [1, 1, 1]} : vector<6x18x8xf32> to vector<4x18x8xf32>
    %51 = vector.extract_strided_slice %50 {offsets = [0, 0, 0], sizes = [4, 16, 8], strides = [1, 1, 1]} : vector<4x18x8xf32> to vector<4x16x8xf32>
    %52 = vector.extract_strided_slice %50 {offsets = [0, 1, 0], sizes = [4, 16, 8], strides = [1, 1, 1]} : vector<4x18x8xf32> to vector<4x16x8xf32>
    %53 = vector.extract_strided_slice %50 {offsets = [0, 2, 0], sizes = [4, 16, 8], strides = [1, 1, 1]} : vector<4x18x8xf32> to vector<4x16x8xf32>
    %54 = tpu.concatenate %51, %52, %53 in 2 : vector<4x16x8xf32>, vector<4x16x8xf32>, vector<4x16x8xf32> -> vector<4x16x24xf32>
    %55 = vector.shape_cast %54 : vector<4x16x24xf32> to vector<64x24xf32>
    %c1 = arith.constant 1 : index
    %c0_32 = arith.constant 0 : index
    %c0_33 = arith.constant 0 : index
    %56 = vector.load %arg8[%c1, %c0_32, %c0_33] : memref<3x24x4xf32, #tpu.memory_space<vmem>>, vector<1x24x4xf32>
    %57 = vector.shape_cast %56 : vector<1x24x4xf32> to vector<24x4xf32>
    %cst_34 = arith.constant dense<0.000000e+00> : vector<64x4xf32>
    %58 = tpu.matmul %55, %57, %cst_34 {dimension_numbers = #tpu.dot_dimension_numbers<[1], [0], [0], [1], [0, 0, 1, 1], [], []>} : vector<64x24xf32>, vector<24x4xf32>, vector<64x4xf32> -> vector<64x4xf32>
    %59 = arith.addf %49, %58 : vector<64x4xf32>
    %60 = vector.extract_strided_slice %40 {offsets = [2, 0, 0], sizes = [4, 18, 8], strides = [1, 1, 1]} : vector<6x18x8xf32> to vector<4x18x8xf32>
    %61 = vector.extract_strided_slice %60 {offsets = [0, 0, 0], sizes = [4, 16, 8], strides = [1, 1, 1]} : vector<4x18x8xf32> to vector<4x16x8xf32>
    %62 = vector.extract_strided_slice %60 {offsets = [0, 1, 0], sizes = [4, 16, 8], strides = [1, 1, 1]} : vector<4x18x8xf32> to vector<4x16x8xf32>
    %63 = vector.extract_strided_slice %60 {offsets = [0, 2, 0], sizes = [4, 16, 8], strides = [1, 1, 1]} : vector<4x18x8xf32> to vector<4x16x8xf32>
    %64 = tpu.concatenate %61, %62, %63 in 2 : vector<4x16x8xf32>, vector<4x16x8xf32>, vector<4x16x8xf32> -> vector<4x16x24xf32>
    %65 = vector.shape_cast %64 : vector<4x16x24xf32> to vector<64x24xf32>
    %c2 = arith.constant 2 : index
    %c0_35 = arith.constant 0 : index
    %c0_36 = arith.constant 0 : index
    %66 = vector.load %arg8[%c2, %c0_35, %c0_36] : memref<3x24x4xf32, #tpu.memory_space<vmem>>, vector<1x24x4xf32>
    %67 = vector.shape_cast %66 : vector<1x24x4xf32> to vector<24x4xf32>
    %cst_37 = arith.constant dense<0.000000e+00> : vector<64x4xf32>
    %68 = tpu.matmul %65, %67, %cst_37 {dimension_numbers = #tpu.dot_dimension_numbers<[1], [0], [0], [1], [0, 0, 1, 1], [], []>} : vector<64x24xf32>, vector<24x4xf32>, vector<64x4xf32> -> vector<64x4xf32>
    %69 = arith.addf %59, %68 : vector<64x4xf32>
    %c0_38 = arith.constant 0 : index
    %c0_39 = arith.constant 0 : index
    %70 = vector.load %arg9[%c0_38, %c0_39] : memref<1x4xf32, #tpu.memory_space<vmem>>, vector<1x4xf32>
    %71 = vector.broadcast %70 : vector<1x4xf32> to vector<64x4xf32>
    %72 = arith.mulf %69, %71 : vector<64x4xf32>
    %c0_40 = arith.constant 0 : index
    %c0_41 = arith.constant 0 : index
    %73 = vector.load %arg10[%c0_40, %c0_41] : memref<1x4xf32, #tpu.memory_space<vmem>>, vector<1x4xf32>
    %74 = vector.broadcast %73 : vector<1x4xf32> to vector<64x4xf32>
    %75 = arith.addf %72, %74 : vector<64x4xf32>
    %cst_42 = arith.constant 0.000000e+00 : f32
    %76 = vector.broadcast %cst_42 : f32 to vector<64x4xf32>
    %77 = arith.maximumf %75, %76 : vector<64x4xf32>
    %78 = vector.shape_cast %77 : vector<64x4xf32> to vector<4x16x4xf32>
    %c0_43 = arith.constant 0 : index
    %c0_44 = arith.constant 0 : index
    %c0_45 = arith.constant 0 : index
    %c0_46 = arith.constant 0 : index
    %79 = vector.load %arg11[%c0_43, %c0_44, %c0_45, %c0_46] : memref<1x4x16x4xf32, #tpu.memory_space<vmem>>, vector<1x4x16x4xf32>
    %80 = vector.shape_cast %79 : vector<1x4x16x4xf32> to vector<4x16x4xf32>
    %81 = vector.shape_cast %78 : vector<4x16x4xf32> to vector<1x4x16x4xf32>
    tpu.vector_store %arg11[%c0_43, %c0_44, %c0_45, %c0_46], %81 {strides = array<i32>} : memref<1x4x16x4xf32, #tpu.memory_space<vmem>>, vector<1x4x16x4xf32>,
    return
  }
  func.func @transform_0(%arg0: i32, %arg1: i32) -> (i32, i32, i32, i32) {
    %c0_i32 = arith.constant 0 : i32
    %c0_i32_0 = arith.constant 0 : i32
    %c0_i32_1 = arith.constant 0 : i32
    return %arg0, %arg1, %c0_i32, %c0_i32_0 : i32, i32, i32, i32
  }
  func.func @transform_1(%arg0: i32, %arg1: i32) -> (i32, i32, i32, i32) {
    %c4_i32 = arith.constant 4 : i32
    %0 = arith.muli %arg1, %c4_i32 : i32
    %c1_i32 = arith.constant 1 : i32
    %1 = arith.subi %0, %c1_i32 : i32
    %c0_i32 = arith.constant 0 : i32
    %2 = arith.maxsi %1, %c0_i32 : i32
    %c0_i32_0 = arith.constant 0 : i32
    %c0_i32_1 = arith.constant 0 : i32
    %c0_i32_2 = arith.constant 0 : i32
    return %arg0, %2, %c0_i32_0, %c0_i32_1 : i32, i32, i32, i32
  }
  func.func @transform_2(%arg0: i32, %arg1: i32) -> (i32, i32, i32, i32) {
    %c4_i32 = arith.constant 4 : i32
    %0 = arith.muli %arg1, %c4_i32 : i32
    %c4_i32_0 = arith.constant 4 : i32
    %1 = arith.addi %0, %c4_i32_0 : i32
    %c15_i32 = arith.constant 15 : i32
    %2 = arith.minsi %1, %c15_i32 : i32
    %c0_i32 = arith.constant 0 : i32
    %c0_i32_1 = arith.constant 0 : i32
    %c0_i32_2 = arith.constant 0 : i32
    return %arg0, %2, %c0_i32, %c0_i32_1 : i32, i32, i32, i32
  }
  func.func @transform_3(%arg0: i32, %arg1: i32) -> (i32, i32, i32, i32) {
    %c0_i32 = arith.constant 0 : i32
    %c0_i32_0 = arith.constant 0 : i32
    %c0_i32_1 = arith.constant 0 : i32
    return %arg0, %arg1, %c0_i32, %c0_i32_0 : i32, i32, i32, i32
  }
  func.func @transform_4(%arg0: i32, %arg1: i32) -> (i32, i32, i32, i32) {
    %c4_i32 = arith.constant 4 : i32
    %0 = arith.muli %arg1, %c4_i32 : i32
    %c1_i32 = arith.constant 1 : i32
    %1 = arith.subi %0, %c1_i32 : i32
    %c0_i32 = arith.constant 0 : i32
    %2 = arith.maxsi %1, %c0_i32 : i32
    %c0_i32_0 = arith.constant 0 : i32
    %c0_i32_1 = arith.constant 0 : i32
    %c0_i32_2 = arith.constant 0 : i32
    return %arg0, %2, %c0_i32_0, %c0_i32_1 : i32, i32, i32, i32
  }
  func.func @transform_5(%arg0: i32, %arg1: i32) -> (i32, i32, i32, i32) {
    %c4_i32 = arith.constant 4 : i32
    %0 = arith.muli %arg1, %c4_i32 : i32
    %c4_i32_0 = arith.constant 4 : i32
    %1 = arith.addi %0, %c4_i32_0 : i32
    %c15_i32 = arith.constant 15 : i32
    %2 = arith.minsi %1, %c15_i32 : i32
    %c0_i32 = arith.constant 0 : i32
    %c0_i32_1 = arith.constant 0 : i32
    %c0_i32_2 = arith.constant 0 : i32
    return %arg0, %2, %c0_i32, %c0_i32_1 : i32, i32, i32, i32
  }
  func.func @transform_6(%arg0: i32, %arg1: i32) -> (i32, i32, i32) {
    %c0_i32 = arith.constant 0 : i32
    %c0_i32_0 = arith.constant 0 : i32
    %c0_i32_1 = arith.constant 0 : i32
    %c0_i32_2 = arith.constant 0 : i32
    return %c0_i32, %c0_i32_0, %c0_i32_1 : i32, i32, i32
  }
  func.func @transform_7(%arg0: i32, %arg1: i32) -> (i32, i32) {
    %c0_i32 = arith.constant 0 : i32
    %c0_i32_0 = arith.constant 0 : i32
    %c0_i32_1 = arith.constant 0 : i32
    return %c0_i32, %c0_i32_0 : i32, i32
  }
  func.func @transform_8(%arg0: i32, %arg1: i32) -> (i32, i32) {
    %c0_i32 = arith.constant 0 : i32
    %c0_i32_0 = arith.constant 0 : i32
    %c0_i32_1 = arith.constant 0 : i32
    return %c0_i32, %c0_i32_0 : i32, i32
  }
  func.func @transform_9(%arg0: i32, %arg1: i32) -> (i32, i32, i32, i32) {
    %c0_i32 = arith.constant 0 : i32
    %c0_i32_0 = arith.constant 0 : i32
    %c0_i32_1 = arith.constant 0 : i32
    return %arg0, %arg1, %c0_i32, %c0_i32_0 : i32, i32, i32, i32
  }
}

module attributes {stable_mosaic.version = 11 : i64} {
  func.func @_conv_kernel(%arg0: i32, %arg1: i32, %arg2: memref<1x4x16x4xf32, #tpu.memory_space<vmem>>, %arg3: memref<1x1x16x4xf32, #tpu.memory_space<vmem>>, %arg4: memref<1x1x16x4xf32, #tpu.memory_space<vmem>>, %arg5: memref<3x12x4xf32, #tpu.memory_space<vmem>>, %arg6: memref<1x4xf32, #tpu.memory_space<vmem>>, %arg7: memref<1x4xf32, #tpu.memory_space<vmem>>, %arg8: memref<1x4x16x4xf32, #tpu.memory_space<vmem>>) attributes {dimension_semantics = [#tpu.dimension_semantics<parallel>, #tpu.dimension_semantics<parallel>], iteration_bounds = array<i64: 2, 4>, scalar_prefetch = 0 : i64, scratch_operands = 0 : i64, tpu.core_type = #tpu.core_type<tc>, window_params = [{transform_indices = @transform_0, window_bounds = array<i64: 1, 4, 16, 4>}, {transform_indices = @transform_1, window_bounds = array<i64: 1, 1, 16, 4>}, {transform_indices = @transform_2, window_bounds = array<i64: 1, 1, 16, 4>}, {pipeline_mode = #tpu.pipeline_mode<synchronous>, transform_indices = @transform_3, window_bounds = array<i64: 3, 12, 4>}, {pipeline_mode = #tpu.pipeline_mode<synchronous>, transform_indices = @transform_4, window_bounds = array<i64: 1, 4>}, {pipeline_mode = #tpu.pipeline_mode<synchronous>, transform_indices = @transform_5, window_bounds = array<i64: 1, 4>}, {transform_indices = @transform_6, window_bounds = array<i64: 1, 4, 16, 4>}]} {
    %c0_i32 = arith.constant 0 : i32
    %0 = arith.cmpi eq, %arg1, %c0_i32 : i32
    %c3_i32 = arith.constant 3 : i32
    %1 = arith.cmpi eq, %arg1, %c3_i32 : i32
    %c0 = arith.constant 0 : index
    %c0_0 = arith.constant 0 : index
    %c0_1 = arith.constant 0 : index
    %c0_2 = arith.constant 0 : index
    %2 = vector.load %arg2[%c0, %c0_0, %c0_1, %c0_2] : memref<1x4x16x4xf32, #tpu.memory_space<vmem>>, vector<1x4x16x4xf32>
    %3 = vector.shape_cast %2 : vector<1x4x16x4xf32> to vector<4x16x4xf32>
    %c0_3 = arith.constant 0 : index
    %c0_4 = arith.constant 0 : index
    %c0_5 = arith.constant 0 : index
    %c0_6 = arith.constant 0 : index
    %4 = vector.load %arg3[%c0_3, %c0_4, %c0_5, %c0_6] : memref<1x1x16x4xf32, #tpu.memory_space<vmem>>, vector<1x1x16x4xf32>
    %5 = vector.shape_cast %4 : vector<1x1x16x4xf32> to vector<1x16x4xf32>
    %c0_7 = arith.constant 0 : index
    %c0_8 = arith.constant 0 : index
    %c0_9 = arith.constant 0 : index
    %c0_10 = arith.constant 0 : index
    %6 = vector.load %arg4[%c0_7, %c0_8, %c0_9, %c0_10] : memref<1x1x16x4xf32, #tpu.memory_space<vmem>>, vector<1x1x16x4xf32>
    %7 = vector.shape_cast %6 : vector<1x1x16x4xf32> to vector<1x16x4xf32>
    %8 = arith.extui %0 : i1 to i32
    %9 = arith.sitofp %8 : i32 to f32
    %cst = arith.constant 1.000000e+00 : f32
    %10 = arith.subf %cst, %9 : f32
    %11 = vector.broadcast %10 : f32 to vector<1x16x4xf32>
    %12 = arith.mulf %5, %11 : vector<1x16x4xf32>
    %13 = arith.extui %1 : i1 to i32
    %14 = arith.sitofp %13 : i32 to f32
    %cst_11 = arith.constant 1.000000e+00 : f32
    %15 = arith.subf %cst_11, %14 : f32
    %16 = vector.broadcast %15 : f32 to vector<1x16x4xf32>
    %17 = arith.mulf %7, %16 : vector<1x16x4xf32>
    %18 = tpu.concatenate %12, %3, %17 in 0 : vector<1x16x4xf32>, vector<4x16x4xf32>, vector<1x16x4xf32> -> vector<6x16x4xf32>
    %cst_12 = arith.constant 0.000000e+00 : f32
    %19 = vector.broadcast %cst_12 : f32 to vector<6x1x4xf32>
    %20 = tpu.concatenate %19, %18, %19 in 1 : vector<6x1x4xf32>, vector<6x16x4xf32>, vector<6x1x4xf32> -> vector<6x18x4xf32>
    %21 = vector.extract_strided_slice %20 {offsets = [0, 0, 0], sizes = [4, 18, 4], strides = [1, 1, 1]} : vector<6x18x4xf32> to vector<4x18x4xf32>
    %22 = vector.extract_strided_slice %21 {offsets = [0, 0, 0], sizes = [4, 16, 4], strides = [1, 1, 1]} : vector<4x18x4xf32> to vector<4x16x4xf32>
    %23 = vector.extract_strided_slice %21 {offsets = [0, 1, 0], sizes = [4, 16, 4], strides = [1, 1, 1]} : vector<4x18x4xf32> to vector<4x16x4xf32>
    %24 = vector.extract_strided_slice %21 {offsets = [0, 2, 0], sizes = [4, 16, 4], strides = [1, 1, 1]} : vector<4x18x4xf32> to vector<4x16x4xf32>
    %25 = tpu.concatenate %22, %23, %24 in 2 : vector<4x16x4xf32>, vector<4x16x4xf32>, vector<4x16x4xf32> -> vector<4x16x12xf32>
    %26 = vector.shape_cast %25 : vector<4x16x12xf32> to vector<64x12xf32>
    %c0_13 = arith.constant 0 : index
    %c0_14 = arith.constant 0 : index
    %c0_15 = arith.constant 0 : index
    %27 = vector.load %arg5[%c0_13, %c0_14, %c0_15] : memref<3x12x4xf32, #tpu.memory_space<vmem>>, vector<1x12x4xf32>
    %28 = vector.shape_cast %27 : vector<1x12x4xf32> to vector<12x4xf32>
    %cst_16 = arith.constant dense<0.000000e+00> : vector<64x4xf32>
    %29 = tpu.matmul %26, %28, %cst_16 {dimension_numbers = #tpu.dot_dimension_numbers<[1], [0], [0], [1], [0, 0, 1, 1], [], []>} : vector<64x12xf32>, vector<12x4xf32>, vector<64x4xf32> -> vector<64x4xf32>
    %30 = vector.extract_strided_slice %20 {offsets = [1, 0, 0], sizes = [4, 18, 4], strides = [1, 1, 1]} : vector<6x18x4xf32> to vector<4x18x4xf32>
    %31 = vector.extract_strided_slice %30 {offsets = [0, 0, 0], sizes = [4, 16, 4], strides = [1, 1, 1]} : vector<4x18x4xf32> to vector<4x16x4xf32>
    %32 = vector.extract_strided_slice %30 {offsets = [0, 1, 0], sizes = [4, 16, 4], strides = [1, 1, 1]} : vector<4x18x4xf32> to vector<4x16x4xf32>
    %33 = vector.extract_strided_slice %30 {offsets = [0, 2, 0], sizes = [4, 16, 4], strides = [1, 1, 1]} : vector<4x18x4xf32> to vector<4x16x4xf32>
    %34 = tpu.concatenate %31, %32, %33 in 2 : vector<4x16x4xf32>, vector<4x16x4xf32>, vector<4x16x4xf32> -> vector<4x16x12xf32>
    %35 = vector.shape_cast %34 : vector<4x16x12xf32> to vector<64x12xf32>
    %c1 = arith.constant 1 : index
    %c0_17 = arith.constant 0 : index
    %c0_18 = arith.constant 0 : index
    %36 = vector.load %arg5[%c1, %c0_17, %c0_18] : memref<3x12x4xf32, #tpu.memory_space<vmem>>, vector<1x12x4xf32>
    %37 = vector.shape_cast %36 : vector<1x12x4xf32> to vector<12x4xf32>
    %cst_19 = arith.constant dense<0.000000e+00> : vector<64x4xf32>
    %38 = tpu.matmul %35, %37, %cst_19 {dimension_numbers = #tpu.dot_dimension_numbers<[1], [0], [0], [1], [0, 0, 1, 1], [], []>} : vector<64x12xf32>, vector<12x4xf32>, vector<64x4xf32> -> vector<64x4xf32>
    %39 = arith.addf %29, %38 : vector<64x4xf32>
    %40 = vector.extract_strided_slice %20 {offsets = [2, 0, 0], sizes = [4, 18, 4], strides = [1, 1, 1]} : vector<6x18x4xf32> to vector<4x18x4xf32>
    %41 = vector.extract_strided_slice %40 {offsets = [0, 0, 0], sizes = [4, 16, 4], strides = [1, 1, 1]} : vector<4x18x4xf32> to vector<4x16x4xf32>
    %42 = vector.extract_strided_slice %40 {offsets = [0, 1, 0], sizes = [4, 16, 4], strides = [1, 1, 1]} : vector<4x18x4xf32> to vector<4x16x4xf32>
    %43 = vector.extract_strided_slice %40 {offsets = [0, 2, 0], sizes = [4, 16, 4], strides = [1, 1, 1]} : vector<4x18x4xf32> to vector<4x16x4xf32>
    %44 = tpu.concatenate %41, %42, %43 in 2 : vector<4x16x4xf32>, vector<4x16x4xf32>, vector<4x16x4xf32> -> vector<4x16x12xf32>
    %45 = vector.shape_cast %44 : vector<4x16x12xf32> to vector<64x12xf32>
    %c2 = arith.constant 2 : index
    %c0_20 = arith.constant 0 : index
    %c0_21 = arith.constant 0 : index
    %46 = vector.load %arg5[%c2, %c0_20, %c0_21] : memref<3x12x4xf32, #tpu.memory_space<vmem>>, vector<1x12x4xf32>
    %47 = vector.shape_cast %46 : vector<1x12x4xf32> to vector<12x4xf32>
    %cst_22 = arith.constant dense<0.000000e+00> : vector<64x4xf32>
    %48 = tpu.matmul %45, %47, %cst_22 {dimension_numbers = #tpu.dot_dimension_numbers<[1], [0], [0], [1], [0, 0, 1, 1], [], []>} : vector<64x12xf32>, vector<12x4xf32>, vector<64x4xf32> -> vector<64x4xf32>
    %49 = arith.addf %39, %48 : vector<64x4xf32>
    %c0_23 = arith.constant 0 : index
    %c0_24 = arith.constant 0 : index
    %50 = vector.load %arg6[%c0_23, %c0_24] : memref<1x4xf32, #tpu.memory_space<vmem>>, vector<1x4xf32>
    %51 = vector.broadcast %50 : vector<1x4xf32> to vector<64x4xf32>
    %52 = arith.mulf %49, %51 : vector<64x4xf32>
    %c0_25 = arith.constant 0 : index
    %c0_26 = arith.constant 0 : index
    %53 = vector.load %arg7[%c0_25, %c0_26] : memref<1x4xf32, #tpu.memory_space<vmem>>, vector<1x4xf32>
    %54 = vector.broadcast %53 : vector<1x4xf32> to vector<64x4xf32>
    %55 = arith.addf %52, %54 : vector<64x4xf32>
    %cst_27 = arith.constant 0.000000e+00 : f32
    %56 = vector.broadcast %cst_27 : f32 to vector<64x4xf32>
    %57 = arith.maximumf %55, %56 : vector<64x4xf32>
    %58 = vector.shape_cast %57 : vector<64x4xf32> to vector<4x16x4xf32>
    %c0_28 = arith.constant 0 : index
    %c0_29 = arith.constant 0 : index
    %c0_30 = arith.constant 0 : index
    %c0_31 = arith.constant 0 : index
    %59 = vector.load %arg8[%c0_28, %c0_29, %c0_30, %c0_31] : memref<1x4x16x4xf32, #tpu.memory_space<vmem>>, vector<1x4x16x4xf32>
    %60 = vector.shape_cast %59 : vector<1x4x16x4xf32> to vector<4x16x4xf32>
    %61 = vector.shape_cast %58 : vector<4x16x4xf32> to vector<1x4x16x4xf32>
    tpu.vector_store %arg8[%c0_28, %c0_29, %c0_30, %c0_31], %61 {strides = array<i32>} : memref<1x4x16x4xf32, #tpu.memory_space<vmem>>, vector<1x4x16x4xf32>,
    return
  }
  func.func @transform_0(%arg0: i32, %arg1: i32) -> (i32, i32, i32, i32) {
    %c0_i32 = arith.constant 0 : i32
    %c0_i32_0 = arith.constant 0 : i32
    %c0_i32_1 = arith.constant 0 : i32
    return %arg0, %arg1, %c0_i32, %c0_i32_0 : i32, i32, i32, i32
  }
  func.func @transform_1(%arg0: i32, %arg1: i32) -> (i32, i32, i32, i32) {
    %c4_i32 = arith.constant 4 : i32
    %0 = arith.muli %arg1, %c4_i32 : i32
    %c1_i32 = arith.constant 1 : i32
    %1 = arith.subi %0, %c1_i32 : i32
    %c0_i32 = arith.constant 0 : i32
    %2 = arith.maxsi %1, %c0_i32 : i32
    %c0_i32_0 = arith.constant 0 : i32
    %c0_i32_1 = arith.constant 0 : i32
    %c0_i32_2 = arith.constant 0 : i32
    return %arg0, %2, %c0_i32_0, %c0_i32_1 : i32, i32, i32, i32
  }
  func.func @transform_2(%arg0: i32, %arg1: i32) -> (i32, i32, i32, i32) {
    %c4_i32 = arith.constant 4 : i32
    %0 = arith.muli %arg1, %c4_i32 : i32
    %c4_i32_0 = arith.constant 4 : i32
    %1 = arith.addi %0, %c4_i32_0 : i32
    %c15_i32 = arith.constant 15 : i32
    %2 = arith.minsi %1, %c15_i32 : i32
    %c0_i32 = arith.constant 0 : i32
    %c0_i32_1 = arith.constant 0 : i32
    %c0_i32_2 = arith.constant 0 : i32
    return %arg0, %2, %c0_i32, %c0_i32_1 : i32, i32, i32, i32
  }
  func.func @transform_3(%arg0: i32, %arg1: i32) -> (i32, i32, i32) {
    %c0_i32 = arith.constant 0 : i32
    %c0_i32_0 = arith.constant 0 : i32
    %c0_i32_1 = arith.constant 0 : i32
    %c0_i32_2 = arith.constant 0 : i32
    return %c0_i32, %c0_i32_0, %c0_i32_1 : i32, i32, i32
  }
  func.func @transform_4(%arg0: i32, %arg1: i32) -> (i32, i32) {
    %c0_i32 = arith.constant 0 : i32
    %c0_i32_0 = arith.constant 0 : i32
    %c0_i32_1 = arith.constant 0 : i32
    return %c0_i32, %c0_i32_0 : i32, i32
  }
  func.func @transform_5(%arg0: i32, %arg1: i32) -> (i32, i32) {
    %c0_i32 = arith.constant 0 : i32
    %c0_i32_0 = arith.constant 0 : i32
    %c0_i32_1 = arith.constant 0 : i32
    return %c0_i32, %c0_i32_0 : i32, i32
  }
  func.func @transform_6(%arg0: i32, %arg1: i32) -> (i32, i32, i32, i32) {
    %c0_i32 = arith.constant 0 : i32
    %c0_i32_0 = arith.constant 0 : i32
    %c0_i32_1 = arith.constant 0 : i32
    return %arg0, %arg1, %c0_i32, %c0_i32_0 : i32, i32, i32, i32
  }
}

</mosaic_0001>

<bundles_post_ra>
// kernel: tile.8
= control target key start
LH: loop header
LB: loop body
LE: loop exit
PB: predicated region body
PF: predicated region fallthrough
CT: control target
= control target key end

     0   :  { %s22_s0 = inlined_call_operand.vmem [shape: f32[4], index: 0, kind: input, shape index: {}]   ;;  %s23_s1 = inlined_call_operand.vmem [shape: f32[2,4], index: 1, kind: output, shape index: {}]  }
   0x1   :  { %v4_v0 = vld [vmem:[%s22_s0] ss:$0 sm:$0xff] }
   0x2   :  { %5 = vst [vmem:[%s23_s1] sm:$0x3] %v4_v0 }

// kernel: tile.9
= control target key start
LH: loop header
LB: loop body
LE: loop exit
PB: predicated region body
PF: predicated region fallthrough
CT: control target
= control target key end

     0   :  { %vm7_vm0 = vcmask 31744   ;;  %vm13_vm1 = vcmask 64544   ;;  %s39_s0 = inlined_call_operand.vmem [shape: f32[2,4], index: 0, kind: input, shape index: {}]   ;;  %s40_s1 = inlined_call_operand.vmem [shape: f32[1,8], index: 1, kind: output, shape index: {}]  }
   0x1   :  { %v4_v0 = vld [vmem:[%s39_s0] sm:$0x3]  ;;  %s22_s0 = smov 4  }
   0x2   :  { %5 = vst [vmem:[#allocation1] sm:$0x3] %v4_v0 }
   0x9   :  { %v10_v1 = vld [vmem:[#allocation1 + $0x1] sm:$0x1]   ;;  %v6_v2 = vld [vmem:[#allocation1] sm:$0x1]  }
   0xa   :  { %11 = vrot.lane.b32.xlu0 %v10_v1, %s22_s0  ;;  %8 = vst.msk [vmem:[#allocation0] sm:$0x1] %vm7_vm0, %v6_v2  }
  0x7c   :  { %v12_v3 = vpop.permute.xlu0 %11  }
  0x7d   :  { %14 = vst.msk [vmem:[#allocation0] sm:$0x1] %vm13_vm1, %v12_v3  }
  0x84   :  { %v17_v4 = vld [vmem:[#allocation0] sm:$0x1] }
  0x85   :  { %20 = vst [vmem:[%s40_s1] sm:$0x1] %v17_v4 }

// kernel: unet_decoder_forward.3
= control target key start
LH: loop header
LB: loop body
LE: loop exit
PB: predicated region body
PF: predicated region fallthrough
CT: control target
= control target key end

     0   :  { %s534_s12 = smov 0   ;;  %s536_s13 = smov 0   ;;  %s613_s0 = inlined_call_operand.vmem [shape: f32[2,8,8,8], index: 0, kind: input, shape index: {}]   ;;  %s614_s1 = inlined_call_operand.vmem [shape: f32[2,8,8], index: 1, kind: input, shape index: {}]   ;;  %s615_s2 = inlined_call_operand.vmem [shape: f32[1,8], index: 2, kind: input, shape index: {}]   ;;  %s616_s3 = inlined_call_operand.vmem [shape: f32[2,8,2,8,8], index: 3, kind: output, shape index: {}]  }
   0x1   :  { %s538_s14 = smov 0   ;;  %s540_s15 = smov 0  }
   0x2   :  { %s542_s16 = smov 0  }
   0x3 LB: > { %s22_s17 = sadd.s32 1, %s504_s14  ;;  %s25_s18 = sadd.s32 1, %s508_s15  ;;  %s512_s16 = sphi %s542_s16, %s13_s16   ;;  %s508_s15 = sphi %s540_s15, %s620_s15   ;;  %s504_s14 = sphi %s538_s14, %s619_s14   ;;  %s500_s13 = sphi %s536_s13, %s618_s13   ;;  %s496_s12 = sphi %s534_s12, %s617_s12  }
   0x4   : > { %p23_p0 = scmp.ge.s32.totalorder %s22_s17, 2  ;;  %p407_p1 = scmp.ge.s32.totalorder %s512_s16, 1 }
   0x5   : > { %p158_p2 = scmp.lt.s32.totalorder %s512_s16, 5 }
   0x6   : > { %s622_s17 = smov (%p23_p0, %s22_s17), 0  ;;  %s624_s18 = smov (!%p23_p0, %s25_s18), %s508_s15 }
   0x7   : > { %p159_p3 = pnand %p407_p1, %p158_p2  ;;  %p27_p4 = scmp.ge.s32.totalorder %s624_s18, 2 }
   0x8   : > { %s408_s23 = sshll.u32 (!%p159_p3), %s496_s12, 2  ;;  %p192_p5 = scmp.lt.s32.totalorder (!%p159_p3), %s500_s13, 1 }
   0x9   : > { %s626_s18 = smov (%p27_p4, %s624_s18), 0  ;;  %162 = sbr.rel (%p159_p3) target bundleno = 164 (0xa4), region = 32 }
   0xa   : > { %p194_p6 = scmp.lt.s32.totalorder (!%p159_p3), %s408_s23, 7 }
   0xe   : > { %v216_v0 = vld [vmem:[%s614_s1] sm:$0xff]  ;;  %v419_v1 = vld [vmem:[%s614_s1 + $0x8] sm:$0xff]  ;;  %s628_s13 = smov (!%p192_p5, %s500_s13), 1  ;;  %s630_s23 = smov (!%p194_p6, %s408_s23), 7  ;;  %vm221_vm0 = vcmask 64512  }
   0xf   : > { %430 = vmatpush.msra.mxu2 %v216_v0  ;;  %431 = vmatpush.msra.mxu3 %v419_v1  ;;  %s409_s24 = sshll.u32 %s628_s13, 3  ;;  %s413_s25 = sshll.u32 %s628_s13, 4  ;;  %v472_v6 = vld [vmem:[%s615_s2] ss:$0 sm:$0xff] }
  0x10   : > { %249 = vmatpush.msra.mxu0 %v216_v0  ;;  %288 = vmatpush.msra.mxu1 %v419_v1  ;;  %s197_s26 = sadd.s32 %s409_s24, %s630_s23  ;;  %s412_s27 = sshll.u32 %s630_s23, 1  ;;  %v473_v7 = vld [vmem:[%s615_s2] ss:$0 sm:$0xff] }
  0x11   : > { %s410_s28 = sshll.u32 %s197_s26, 3  ;;  %s208_s29 = sadd.s32 %s413_s25, %s412_s27 }
  0x12   : > { %s199_s5 = scalar_lea.vmem %s613_s0, %s410_s28  ;;  %s414_s6 = sshll.u32 %s208_s29, 3 }
  0x13   : > { %v214_v2 = vld [vmem:[%s199_s5 + $0x10] sm:$0xff]  ;;  %v212_v3 = vld [vmem:[%s199_s5] sm:$0xff]  ;;  %v215_v4 = vld [vmem:[%s199_s5 + $0x18] sm:$0xff]  ;;  %s210_s13 = scalar_lea.vmem %s616_s3, %s414_s6 }
  0x14   : > { %417 = vmatmul.msk.f32.vlgmr.msra.gmra.mxu2 %vm221_vm0, %v214_v2  ;;  %422 = vmatmul.msk.f32.vlgmr.msra.gmra.mxu3 %vm221_vm0, %v214_v2  ;;  %v213_v5 = vld [vmem:[%s199_s5 + $0x8] sm:$0xff] }
  0x15   : > { %415 = vmatmul.msk.f32.vlgmr.msra.gmra.mxu0 %vm221_vm0, %v212_v3  ;;  %420 = vmatmul.msk.f32.vlgmr.msra.gmra.mxu1 %vm221_vm0, %v212_v3 }
  0x1c   : > { %418 = vmatmul.msk.f32.gmra.mxu2 %vm221_vm0, %v215_v4  ;;  %423 = vmatmul.msk.f32.gmra.mxu3 %vm221_vm0, %v215_v4 }
  0x1d   : > { %416 = vmatmul.msk.f32.gmra.mxu0 %vm221_vm0, %v213_v5  ;;  %421 = vmatmul.msk.f32.gmra.mxu1 %vm221_vm0, %v213_v5 }
  0x92   : > { %v251_v8 = vpop.f32.mrf.mxu0  ;;  %v290_v9 = vpop.f32.mrf.mxu1 }
  0x93   : > { %v252_v10 = vadd.f32 %v472_v6, %v251_v8  ;;  %v291_v11 = vadd.f32 %v473_v7, %v290_v9 }
  0x95   : > { %263 = vst.msk [vmem:[%s210_s13] sm:$0xff] %vm221_vm0, %v252_v10 }
  0x96   : > { %424 = vst.msk [vmem:[%s210_s13 + $0x8] sm:$0xff] %vm221_vm0, %v291_v11 }
  0x97   : > { %v257_v12 = vpop.f32.mrf.mxu2  ;;  %v296_v13 = vpop.f32.mrf.mxu3 }
  0x98   : > { %v258_v14 = vadd.f32 %v472_v6, %v257_v12  ;;  %v297_v15 = vadd.f32 %v473_v7, %v296_v13 }
  0x9a   : > { %265 = vst.msk [vmem:[%s210_s13 + $0x20] sm:$0xff] %vm221_vm0, %v258_v14  ;;  %v254_v16 = vpop.f32.mrf.mxu0  ;;  %v293_v17 = vpop.f32.mrf.mxu1 }
  0x9b   : > { %426 = vst.msk [vmem:[%s210_s13 + $0x28] sm:$0xff] %vm221_vm0, %v297_v15  ;;  %v255_v18 = vadd.f32 %v472_v6, %v254_v16  ;;  %v294_v19 = vadd.f32 %v473_v7, %v293_v17 }
  0x9d   : > { %264 = vst.msk [vmem:[%s210_s13 + $0x10] sm:$0xff] %vm221_vm0, %v255_v18 }
  0x9e   : > { %425 = vst.msk [vmem:[%s210_s13 + $0x18] sm:$0xff] %vm221_vm0, %v294_v19 }
  0x9f   : > { %v260_v20 = vpop.f32.mrf.mxu2  ;;  %v299_v21 = vpop.f32.mrf.mxu3 }
  0xa0   : > { %v261_v22 = vadd.f32 %v472_v6, %v260_v20  ;;  %v300_v23 = vadd.f32 %v473_v7, %v299_v21 }
  0xa2   : > { %266 = vst.msk [vmem:[%s210_s13 + $0x30] sm:$0xff] %vm221_vm0, %v261_v22 }
  0xa3   : > { %427 = vst.msk [vmem:[%s210_s13 + $0x38] sm:$0xff] %vm221_vm0, %v300_v23 }
  0xa4 PF: > { %s13_s16 = sadd.s32 1, %s512_s16   ;;  %s617_s12 = smov %s504_s14 }
  0xa5   : > { %p10_p7 = scmp.ge.s32.totalorder %s13_s16, 6   ;;  %s618_s13 = smov %s508_s15 }
  0xa6   : > { %s619_s14 = smov %s622_s17  ;;  %s620_s15 = smov %s626_s18 }
  0xa7   :  { %12 = sbr.rel (!%p10_p7) target bundleno = 3 (0x3), region = 64 }

// kernel: unet_decoder_forward.4
= control target key start
LH: loop header
LB: loop body
LE: loop exit
PB: predicated region body
PF: predicated region fallthrough
CT: control target
= control target key end

     0   :  { %s1753_s30 = smov 0   ;;  %s1755_s10 = smov 0   ;;  %s2208_s0 = inlined_call_operand.vmem [shape: f32[2,16,16,4], index: 0, kind: input, shape index: {}, may-alias: {0,1,2}]   ;;  %s2209_s1 = inlined_call_operand.vmem [shape: f32[2,16,16,4], index: 1, kind: input, shape index: {}, may-alias: {0,1,2}]   ;;  %s2210_s2 = inlined_call_operand.vmem [shape: f32[2,16,16,4], index: 2, kind: input, shape index: {}, may-alias: {0,1,2}]   ;;  %s2211_s3 = inlined_call_operand.vmem [shape: f32[2,16,16,4], index: 3, kind: input, shape index: {}, may-alias: {3,4,5}]   ;;  %s2212_s4 = inlined_call_operand.vmem [shape: f32[2,16,16,4], index: 4, kind: input, shape index: {}, may-alias: {3,4,5}]   ;;  %s2213_s5 = inlined_call_operand.vmem [shape: f32[2,16,16,4], index: 5, kind: input, shape index: {}, may-alias: {3,4,5}]   ;;  %s2214_s6 = inlined_call_operand.vmem [shape: f32[3,24,4], index: 6, kind: input, shape index: {}]   ;;  %s2215_s7 = inlined_call_operand.vmem [shape: f32[1,4], index: 7, kind: input, shape index: {}]   ;;  %s2216_s8 = inlined_call_operand.vmem [shape: f32[1,4], index: 8, kind: input, shape index: {}]   ;;  %s2217_s9 = inlined_call_operand.vmem [shape: f32[2,16,16,4], index: 9, kind: output, shape index: {}]  }
   0x1   :  { %s1757_s11 = smov 0   ;;  %s1759_s12 = smov 0  }
   0x2   :  { %s1761_s13 = smov 0  }
   0x3 LB: > { %s28_s14 = sadd.s32 1, %s1690_s11  ;;  %s31_s15 = sadd.s32 1, %s1694_s12  ;;  %s1698_s13 = sphi %s1761_s13, %s19_s13   ;;  %s1694_s12 = sphi %s1759_s12, %s2222_s12   ;;  %s1690_s11 = sphi %s1757_s11, %s2221_s11   ;;  %s1686_s10 = sphi %s1755_s10, %s2220_s10   ;;  %s1682_s30 = sphi %s1753_s30, %s2219_s30  }
   0x4   : > { %p29_p0 = scmp.ge.s32.totalorder %s28_s14, 4  ;;  %p1523_p1 = scmp.ge.s32.totalorder %s1698_s13, 1 }
   0x5   : > { %p455_p2 = scmp.lt.s32.totalorder %s1698_s13, 9 }
   0x6   : > { %s2224_s14 = smov (%p29_p0, %s28_s14), 0  ;;  %s2226_s15 = smov (!%p29_p0, %s31_s15), %s1694_s12 }
   0x7   : > { %p456_p3 = pnand %p1523_p1, %p455_p2  ;;  %p33_p4 = scmp.ge.s32.totalorder %s2226_s15, 2 }
   0x8   : > { %s1786_s16 = sshll.u32 (!%p456_p3), %s1682_s30, 2  ;;  %p564_p5 = scmp.lt.s32.totalorder (!%p456_p3), %s1686_s10, 1 }
   0x9   : > { %s2228_s15 = smov (%p33_p4, %s2226_s15), 0  ;;  %459 = sbr.rel (%p456_p3) target bundleno = 479 (0x1df), region = 56 }
   0xa   : > { %p566_p6 = scmp.lt.s32.totalorder (!%p456_p3), %s1786_s16, 15  ;;  %s1529_s19 = sadd.s32 (!%p456_p3), 4294967295, %s1786_s16 }
   0xb   : > { %p576_p7 = scmp.gt.s32.totalorder (!%p456_p3), %s1529_s19, 0  ;;  %p1530_p8 = scmp.lt.s32.totalorder (!%p456_p3), %s1529_s19, 15 }
   0xc   : > { %p664_p9 = scmp.eq.s32.totalorder (!%p456_p3), %s1682_s30, 0  ;;  %s1700_s27 = smov (!%p456_p3), 4  }
   0xd   : > { %s592_s29 = sadd.s32 (!%p456_p3), 4, %s1786_s16  ;;  %p665_p11 = scmp.eq.s32.totalorder (!%p456_p3), %s1682_s30, 3 }
   0xe   : > { %s2230_s10 = smov (!%p564_p5, %s1686_s10), 1  ;;  %vm702_vm0 = vcmask 1040384   ;;  %s2232_s19 = smov (!%p576_p7, %s1529_s19), 0  ;;  %vm887_vm1 = vcmask 31744   ;;  %vm918_vm2 = vcmask 1046528   ;;  %vm963_vm3 = vcmask 1045504  }
   0xf   : > { %s567_s17 = scalar_select %p566_p6, %s1786_s16, 15  ;;  %vm1017_vm4 = vcmask 130048   ;;  %vm1008_vm5 = vcmask 64512   ;;  %vm1062_vm6 = vcmask 195584  }
  0x10   : > { %s1790_s18 = sshll.u32 %s2230_s10, 5  ;;  %s2234_s19 = smov (!%p1530_p8, %s2232_s19), 15 }
  0x11   : > { %s1525_s20 = sshll.u32 %s567_s17, 1  ;;  %s1535_s28 = sshll.u32 %s2234_s19, 1 }
  0x12   : > { %s570_s21 = sadd.s32 %s1790_s18, %s1525_s20  ;;  %s1815_s10 = sadd.s32 %s1535_s28, %s1790_s18 }
  0x13   : > { %s1794_s22 = sshll.u32 %s570_s21, 3  ;;  %s1537_s20 = sshll.u32 %s1815_s10, 3 }
  0x14   : > { %s1800_s25 = scalar_lea.vmem %s2211_s3, %s1794_s22  ;;  %p1818_p10 = scmp.lt.s32.totalorder %s592_s29, 15 }
  0x15   : > { %v757_v0 = vld [vmem:[%s1800_s25 + $0x30] sm:$0xff]  ;;  %v754_v4 = vld [vmem:[%s1800_s25 + $0x18] sm:$0xff]  ;;  %s678_s26 = scalar_select %p664_p9, 1, 0  ;;  %v751_v14 = vld [vmem:[%s1800_s25] sm:$0xff] }
  0x16   : > { %v753_v1 = vld [vmem:[%s1800_s25 + $0x10] sm:$0xff]  ;;  %v791_v2 = vrot.slane %v757_v0, 7  ;;  %v758_v5 = vld [vmem:[%s1800_s25 + $0x38] sm:$0xff]  ;;  %v786_v6 = vrot.slane %v754_v4, 7  ;;  %s631_s19 = scalar_lea.vmem %s2212_s4, %s1537_s20  ;;  %v752_v15 = vld [vmem:[%s1800_s25 + $0x8] sm:$0xff]  ;;  %s2236_s29 = smov (!%p1818_p10, %s592_s29), 15 }
  0x17   : > { %v785_v3 = vrot.slane %v753_v1, 7  ;;  %v792_v10 = vrot.slane %v758_v5, 7  ;;  %s679_s17 = scvt.s32.f32 %s678_s26  ;;  %v759_v11 = vld [vmem:[%s631_s19] sm:$0xff]  ;;  %v760_v18 = vld [vmem:[%s631_s19 + $0x8] sm:$0xff]  ;;  %v782_v19 = vrot.slane %v751_v14, 7  ;;  %v783_v20 = vrot.slane %v752_v15, 7 }
  0x18   : > { %v813_v7 = vsel %vm702_vm0, 0.0, %v791_v2  ;;  %v817_v9 = vsel %vm702_vm0, %v786_v6, 0.0  ;;  %s2238_s29 = smov (!%p1818_p10, %s2236_s29), 15  ;;  %v755_v30 = vld [vmem:[%s1800_s25 + $0x20] sm:$0xff]  ;;  %v756_v31 = vld [vmem:[%s1800_s25 + $0x28] sm:$0xff]  ;;  %s1701_s10 = smov 8  }
  0x19   : > { %v811_v8 = vsel %vm702_vm0, 0.0, %v785_v3  ;;  %857 = vrot.lane.b32.xlu1 %v813_v7, %s1700_s27  ;;  %849 = vrot.lane.b32.xlu2 %v817_v9, %s1700_s27  ;;  %s680_s16 = ssub.f32 1.0, %s679_s17  ;;  %v793_v12 = vsel %vm702_vm0, %v791_v2, %v792_v10  ;;  %v787_v13 = vsel %vm702_vm0, %v785_v3, %v786_v6  ;;  %v810_v24 = vsel %vm702_vm0, 0.0, %v782_v19  ;;  %s1542_s28 = sshll.u32 %s2238_s29, 1 }
  0x1a   : > { %845 = vrot.lane.b32.xlu0 %v811_v8, %s1700_s27  ;;  %v784_v25 = vsel %vm702_vm0, %v782_v19, %v783_v20  ;;  %s684_s26 = scalar_select %p665_p11, 1, 0  ;;  %v819_v28 = vsel %vm702_vm0, %v792_v10, 0.0  ;;  %v816_v32 = vsel %vm702_vm0, %v783_v20, 0.0  ;;  %v788_v33 = vrot.slane %v755_v30, 7 }
  0x1b   : > { %v1831_v16 = vstv %s680_s16  ;;  %s601_s30 = sadd.s32 %s1542_s28, %s1790_s18  ;;  %v789_v34 = vrot.slane %v756_v31, 7  ;;  %s1885_s16 = scalar_lea.vmem %s2208_s0, %s1794_s22 }
  0x1c   : > { %v763_v17 = vmul.f32 %v759_v11, %v1831_v16  ;;  %v764_v23 = vmul.f32 %v760_v18, %v1831_v16  ;;  %s685_s17 = scvt.s32.f32 %s684_s26  ;;  %s1851_s21 = sshll.u32 %s601_s30, 3  ;;  %v812_v38 = vsel %vm702_vm0, 0.0, %v788_v33  ;;  %v672_v48 = vld [vmem:[%s1885_s16 + $0x30] sm:$0xff]  ;;  %v669_v50 = vld [vmem:[%s1885_s16 + $0x18] sm:$0xff]  ;;  %v666_v61 = vld [vmem:[%s1885_s16] sm:$0xff] }
  0x1d   : > { %s648_s19 = scalar_lea.vmem %s2213_s5, %s1851_s21  ;;  %v790_v39 = vsel %vm702_vm0, %v788_v33, %v789_v34  ;;  %v818_v44 = vsel %vm702_vm0, %v789_v34, 0.0  ;;  %v668_v49 = vld [vmem:[%s1885_s16 + $0x10] sm:$0xff]  ;;  %v715_v51 = vrot.slane %v672_v48, 7  ;;  %v1891_v53 = vld [vmem:[%s1885_s16 + $0x38] sm:$0xff]  ;;  %v710_v56 = vrot.slane %v669_v50, 7  ;;  %v1898_v62 = vld [vmem:[%s1885_s16 + $0x8] sm:$0xff]  ;;  %s586_s28 = scalar_lea.vmem %s2209_s1, %s1537_s20 }
  0x1e   : > { %v779_v21 = vrot.slane %v763_v17, 7  ;;  %v780_v26 = vrot.slane %v764_v23, 7  ;;  %s686_s29 = ssub.f32 1.0, %s685_s17  ;;  %v761_v36 = vld [vmem:[%s648_s19] sm:$0xff]  ;;  %v762_v37 = vld [vmem:[%s648_s19 + $0x8] sm:$0xff]  ;;  %v709_v52 = vrot.slane %v668_v49, 7 }
  0x1f   : > { %v716_v57 = vrot.slane %v1891_v53, 7  ;;  %v743_v59 = vsel %vm702_vm0, 0.0, %v715_v51  ;;  %v706_v5 = vrot.slane %v666_v61, 7  ;;  %v707_v6 = vrot.slane %v1898_v62, 7  ;;  %v674_v19 = vld [vmem:[%s586_s28] sm:$0xff]  ;;  %s1702_s20 = smov 16  }
  0x20   : > { %v809_v22 = vsel %vm702_vm0, 0.0, %v779_v21  ;;  %v781_v27 = vsel %vm702_vm0, %v779_v21, %v780_v26  ;;  %v815_v29 = vsel %vm702_vm0, %v780_v26, 0.0  ;;  %v1864_v35 = vstv %s686_s29  ;;  %v675_v21 = vld [vmem:[%s586_s28 + $0x8] sm:$0xff]  ;;  %v670_v61 = vld [vmem:[%s1885_s16 + $0x20] sm:$0xff]  ;;  %s603_s29 = scalar_lea.vmem %s2210_s2, %s1851_s21  ;;  %s2161_s28 = scalar_lea.vmem %s2217_s9, %s1794_s22 }
  0x21   : > { %859 = vrot.lane.b32.xlu1 %v793_v12, %s1700_s27  ;;  %833 = vrot.lane.b32.xlu2 %v809_v22, %s1700_s27  ;;  %v765_v40 = vmul.f32 %v761_v36, %v1864_v35  ;;  %v766_v41 = vmul.f32 %v762_v37, %v1864_v35  ;;  %v741_v60 = vsel %vm702_vm0, 0.0, %v709_v52  ;;  %v717_v1 = vsel %vm702_vm0, %v715_v51, %v716_v57 }
  0x22   : > { %847 = vrot.lane.b32.xlu0 %v787_v13, %s1700_s27  ;;  %v711_v2 = vsel %vm702_vm0, %v709_v52, %v710_v56  ;;  %v740_v22 = vsel %vm702_vm0, 0.0, %v706_v5  ;;  %v708_v23 = vsel %vm702_vm0, %v706_v5, %v707_v6  ;;  %v671_v5 = vld [vmem:[%s1885_s16 + $0x28] sm:$0xff] }
  0x23   : > { %v794_v42 = vrot.slane %v765_v40, 7  ;;  %v795_v43 = vrot.slane %v766_v41, 7 }
  0x25   : > { %v814_v45 = vsel %vm702_vm0, 0.0, %v794_v42  ;;  %v796_v46 = vsel %vm702_vm0, %v794_v42, %v795_v43  ;;  %v820_v47 = vsel %vm702_vm0, %v795_v43, 0.0  ;;  %v749_v43 = vsel %vm702_vm0, %v716_v57, 0.0 }
  0x29   : > { %841 = vrot.lane.b32.xlu1 %v784_v25, %s1700_s27  ;;  %835 = vrot.lane.b32.xlu2 %v781_v27, %s1700_s27  ;;  %v682_v25 = vmul.f32 %v1831_v16, %v674_v19 }
  0x2a   : > { %839 = vrot.lane.b32.xlu0 %v810_v24, %s1700_s27  ;;  %v747_v24 = vsel %vm702_vm0, %v710_v56, 0.0 }
  0x2b   : > { %v703_v41 = vrot.slane %v682_v25, 7 }
  0x2d   : > { %v739_v49 = vsel %vm702_vm0, 0.0, %v703_v41 }
  0x31   : > { %837 = vrot.lane.b32.xlu1 %v815_v29, %s1700_s27  ;;  %843 = vrot.lane.b32.xlu2 %v816_v32, %s1700_s27  ;;  %v683_v29 = vmul.f32 %v1831_v16, %v675_v21 }
  0x32   : > { %861 = vrot.lane.b32.xlu0 %v819_v28, %s1700_s27 }
  0x33   : > { %v704_v42 = vrot.slane %v683_v29, 7 }
  0x35   : > { %v705_v50 = vsel %vm702_vm0, %v703_v41, %v704_v42 }
  0x39   : > { %853 = vrot.lane.b32.xlu1 %v790_v39, %s1700_s27  ;;  %855 = vrot.lane.b32.xlu2 %v818_v44, %s1700_s27 }
  0x3a   : > { %851 = vrot.lane.b32.xlu0 %v812_v38, %s1700_s27 }
  0x41   : > { %865 = vrot.lane.b32.xlu1 %v796_v46, %s1700_s27  ;;  %867 = vrot.lane.b32.xlu2 %v820_v47, %s1700_s27 }
  0x42   : > { %863 = vrot.lane.b32.xlu0 %v814_v45, %s1700_s27 }
  0x73   : > { %v850_v58 = vpop.permute.xlu2 %849 }
  0x74   : > { %v896_v39 = vsel %vm887_vm1, %v747_v24, %v850_v58 }
  0x75   : > { %v932_v45 = vrot.slane %v896_v39, 1  ;;  %v977_v46 = vrot.slane %v896_v39, 2 }
  0x7b   : > { %v834_v20 = vpop.permute.xlu2 %833 }
  0x83   : > { %v836_v44 = vpop.permute.xlu2 %835 }
  0x84   : > { %v1973_v56 = vsel %vm887_vm1, %v705_v50, %v836_v44 }
  0x8b   : > { %v858_v54 = vpop.permute.xlu1 %857 }
  0x8c   : > { %v846_v55 = vpop.permute.xlu0 %845  ;;  %v1901_v63 = vsel %vm887_vm1, %v743_v59, %v858_v54  ;;  %v920_v59 = vrot.slane %v1973_v56, 1 }
  0x8d   : > { %v1904_v0 = vsel %vm887_vm1, %v741_v60, %v846_v55  ;;  %v1032_v7 = vrot.slane %v1901_v63, 1  ;;  %v1043_v37 = vrot.slane %v1901_v63, 2  ;;  %v1970_v55 = vsel %vm887_vm1, %v739_v49, %v834_v20 }
  0x8e   : > { %v929_v8 = vrot.slane %v1904_v0, 1  ;;  %v974_v11 = vrot.slane %v1904_v0, 2  ;;  %v919_v58 = vrot.slane %v1970_v55, 1 }
  0x93   : > { %v860_v3 = vpop.permute.xlu1 %859 }
  0x94   : > { %v848_v4 = vpop.permute.xlu0 %847  ;;  %v1917_v9 = vsel %vm887_vm1, %v717_v1, %v860_v3  ;;  %v964_v1 = vrot.slane %v1970_v55, 2  ;;  %v844_v3 = vpop.permute.xlu2 %843 }
  0x95   : > { %v1920_v10 = vsel %vm887_vm1, %v711_v2, %v848_v4  ;;  %v1033_v12 = vrot.slane %v1917_v9, 1  ;;  %v1044_v28 = vrot.slane %v1917_v9, 2  ;;  %v965_v2 = vrot.slane %v1973_v56, 2 }
  0x96   : > { %v930_v13 = vrot.slane %v1920_v10, 1  ;;  %v975_v14 = vrot.slane %v1920_v10, 2  ;;  %v746_v4 = vsel %vm702_vm0, %v707_v6, 0.0 }
  0x97   : > { %v1034_v15 = vsel %vm918_vm2, %v1032_v7, %v1033_v12  ;;  %v1045_v40 = vsel %vm963_vm3, %v1043_v37, %v1044_v28  ;;  %v745_v7 = vsel %vm702_vm0, %v704_v42, 0.0  ;;  %v966_v6 = vsel %vm963_vm3, %v964_v1, %v965_v2 }
  0x98   : > { %v976_v17 = vsel %vm963_vm3, %v974_v11, %v975_v14  ;;  %v931_v18 = vsel %vm918_vm2, %v929_v8, %v930_v13  ;;  %1037 = vrot.lane.b32.xlu1 %v1034_v15, %s1701_s10  ;;  %v978_v53 = vsel %vm963_vm3, %v975_v14, %v977_v46  ;;  %v933_v54 = vsel %vm918_vm2, %v930_v13, %v932_v45  ;;  %v677_v15 = vld [vmem:[%s603_s29 + $0x8] sm:$0xff] }
  0x99   : > { %992 = vrot.lane.b32.xlu2 %v976_v17, %s1702_s20  ;;  %947 = vrot.lane.b32.xlu0 %v931_v18, %s1701_s10  ;;  %v712_v8 = vrot.slane %v670_v61, 7  ;;  %v893_v11 = vsel %vm887_vm1, %v746_v4, %v844_v3  ;;  %v713_v14 = vrot.slane %v671_v5, 7  ;;  %v676_v17 = vld [vmem:[%s603_s29] sm:$0xff]  ;;  %v689_v25 = vmul.f32 %v1864_v35, %v677_v15  ;;  %v1589_v15 = vld [vmem:[%s2214_s6 + $0x30] sm:$0xff] }
  0x9a   : > { %v927_v20 = vrot.slane %v893_v11, 1  ;;  %v688_v24 = vmul.f32 %v1864_v35, %v676_v17  ;;  %v972_v45 = vrot.slane %v893_v11, 2  ;;  %v1570_v17 = vld [vmem:[%s2214_s6 + $0x18] sm:$0xff] }
  0x9b   : > { %v842_v27 = vpop.permute.xlu1 %841  ;;  %v742_v21 = vsel %vm702_vm0, 0.0, %v712_v8  ;;  %v719_v37 = vrot.slane %v689_v25, 7  ;;  %v748_v46 = vsel %vm702_vm0, %v713_v14, 0.0 }
  0x9c   : > { %v840_v26 = vpop.permute.xlu0 %839  ;;  %v1944_v31 = vsel %vm887_vm1, %v708_v23, %v842_v27  ;;  %v714_v23 = vsel %vm702_vm0, %v712_v8, %v713_v14  ;;  %v1590_v14 = vld [vmem:[%s2214_s6 + $0x38] sm:$0xff] }
  0x9d   : > { %v1941_v30 = vsel %vm887_vm1, %v740_v22, %v840_v26  ;;  %v925_v34 = vrot.slane %v1944_v31, 1  ;;  %v970_v36 = vrot.slane %v1944_v31, 2 }
  0x9e   : > { %v924_v32 = vrot.slane %v1941_v30, 1  ;;  %v969_v33 = vrot.slane %v1941_v30, 2 }
  0x9f   : > { %v928_v29 = vsel %vm918_vm2, %v925_v34, %v927_v20  ;;  %v1027_v20 = vld [vmem:[%s2214_s6 + $0x8] sm:$0xff] }
  0xa0   : > { %v971_v16 = vsel %vm963_vm3, %v969_v33, %v970_v36  ;;  %v926_v38 = vsel %vm918_vm2, %v924_v32, %v925_v34  ;;  %v718_v33 = vrot.slane %v688_v24, 7 }
  0xa1   : > { %988 = vrot.lane.b32.xlu1 %v971_v16, %s1702_s20  ;;  %943 = vrot.lane.b32.xlu2 %v926_v38, %s1701_s10 }
  0xa2   : > { %1048 = vrot.lane.b32.xlu0 %v1045_v40, %s1702_s20  ;;  %v856_v40 = vpop.permute.xlu2 %855  ;;  %v744_v41 = vsel %vm702_vm0, 0.0, %v718_v33 }
  0xa3   : > { %v838_v57 = vpop.permute.xlu1 %837 }
  0xa4   : > { %v862_v47 = vpop.permute.xlu0 %861  ;;  %v890_v62 = vsel %vm887_vm1, %v745_v7, %v838_v57 }
  0xa5   : > { %v902_v48 = vsel %vm887_vm1, %v749_v43, %v862_v47  ;;  %v967_v22 = vrot.slane %v890_v62, 2  ;;  %v922_v26 = vrot.slane %v890_v62, 1  ;;  %v720_v43 = vsel %vm702_vm0, %v718_v33, %v719_v37  ;;  %v1572_v62 = vld [vmem:[%s2214_s6 + $0x28] sm:$0xff] }
  0xa6   : > { %v1035_v51 = vrot.slane %v902_v48, 1  ;;  %v1046_v60 = vrot.slane %v902_v48, 2  ;;  %1100 = vmatpush.msra.mxu0 %v1572_v62  ;;  %1606 = vmatpush.msra.mxu3 %v1572_v62 }
  0xa7   : > { %v968_v32 = vsel %vm963_vm3, %v965_v2, %v967_v22  ;;  %v923_v16 = vsel %vm918_vm2, %v920_v59, %v922_v26 }
  0xa8   : > { %v1036_v52 = vsel %vm918_vm2, %v1033_v12, %v1035_v51  ;;  %v921_v12 = vsel %vm918_vm2, %v919_v58, %v920_v59  ;;  %v1047_v13 = vsel %vm963_vm3, %v1044_v28, %v1046_v60  ;;  %v899_v51 = vsel %vm887_vm1, %v748_v46, %v856_v40 }
  0xa9   : > { %994 = vrot.lane.b32.xlu1 %v978_v53, %s1702_s20  ;;  %949 = vrot.lane.b32.xlu2 %v933_v54, %s1701_s10  ;;  %v982_v57 = vrot.slane %v899_v51, 2  ;;  %v750_v58 = vsel %vm702_vm0, %v719_v37, 0.0  ;;  %v937_v60 = vrot.slane %v899_v51, 1 }
  0xaa   : > { %1039 = vrot.lane.b32.xlu0 %v1036_v52, %s1701_s10  ;;  %v973_v52 = vsel %vm963_vm3, %v970_v36, %v972_v45  ;;  %v868_v59 = vpop.permute.xlu2 %867 }
  0xab   : > { %v854_v19 = vpop.permute.xlu1 %853  ;;  %v905_v1 = vsel %vm887_vm1, %v750_v58, %v868_v59 }
  0xac   : > { %v852_v18 = vpop.permute.xlu0 %851  ;;  %v2008_v28 = vsel %vm887_vm1, %v714_v23, %v854_v19  ;;  %v1181_v3 = vrot.slane %v905_v1, 1  ;;  %v1192_v4 = vrot.slane %v905_v1, 2  ;;  %v1028_v19 = vld [vmem:[%s2214_s6 + $0x10] sm:$0xff] }
  0xad   : > { %v2005_v27 = vsel %vm887_vm1, %v742_v21, %v852_v18  ;;  %v935_v39 = vrot.slane %v2008_v28, 1  ;;  %v980_v34 = vrot.slane %v2008_v28, 2  ;;  %1147 = vmatpush.msra.mxu1 %v1028_v19  ;;  %v1026_v21 = vld [vmem:[%s2214_s6] sm:$0xff] }
  0xae   : > { %v934_v35 = vrot.slane %v2005_v27, 1  ;;  %v979_v38 = vrot.slane %v2005_v27, 2 }
  0xaf   : > { %v983_v36 = vsel %vm963_vm3, %v980_v34, %v982_v57  ;;  %v938_v2 = vsel %vm918_vm2, %v935_v39, %v937_v60  ;;  %1148 = vmatpush.msra.mxu1 %v1027_v20 }
  0xb0   : > { %v936_v47 = vsel %vm918_vm2, %v934_v35, %v935_v39  ;;  %v981_v48 = vsel %vm963_vm3, %v979_v38, %v980_v34 }
  0xb1   : > { %939 = vrot.lane.b32.xlu1 %v921_v12, %s1701_s10  ;;  %1050 = vrot.lane.b32.xlu2 %v1047_v13, %s1702_s20  ;;  %v1591_v13 = vld [vmem:[%s2214_s6 + $0x40] sm:$0xff] }
  0xb2   : > { %984 = vrot.lane.b32.xlu0 %v966_v6, %s1702_s20  ;;  %1227 = vmatpush.msra.mxu2 %v1591_v13  ;;  %v1571_v6 = vld [vmem:[%s2214_s6 + $0x20] sm:$0xff] }
  0xb3   : > { %v866_v44 = vpop.permute.xlu1 %865  ;;  %1101 = vmatpush.msra.mxu0 %v1571_v6  ;;  %1607 = vmatpush.msra.mxu3 %v1571_v6 }
  0xb4   : > { %v864_v42 = vpop.permute.xlu0 %863  ;;  %v2031_v50 = vsel %vm887_vm1, %v720_v43, %v866_v44  ;;  %1228 = vmatpush.msra.mxu2 %v1590_v14  ;;  %1149 = vmatpush.msra.mxu1 %v1026_v21 }
  0xb5   : > { %v2028_v49 = vsel %vm887_vm1, %v744_v41, %v864_v42  ;;  %v1179_v54 = vrot.slane %v2031_v50, 1  ;;  %v1190_v7 = vrot.slane %v2031_v50, 2  ;;  %1102 = vmatpush.msra.mxu0 %v1570_v17  ;;  %1608 = vmatpush.msra.mxu3 %v1570_v17 }
  0xb6   : > { %v1178_v53 = vrot.slane %v2028_v49, 1  ;;  %v1189_v5 = vrot.slane %v2028_v49, 2  ;;  %1229 = vmatpush.msra.mxu2 %v1589_v15 }
  0xb7   : > { %v1182_v8 = vsel %vm918_vm2, %v1179_v54, %v1181_v3  ;;  %v1193_v11 = vsel %vm963_vm3, %v1190_v7, %v1192_v4  ;;  %1609 = vmatpush.msrb.mxu3 %v1028_v19 }
  0xb8   : > { %v1180_v61 = vsel %vm918_vm2, %v1178_v53, %v1179_v54  ;;  %v1191_v12 = vsel %vm963_vm3, %v1189_v5, %v1190_v7  ;;  %v2148_v7 = vld [vmem:[%s2215_s7] ss:$0 sm:$0xff] }
  0xb9   : > { %945 = vrot.lane.b32.xlu1 %v928_v29, %s1701_s10  ;;  %986 = vrot.lane.b32.xlu2 %v968_v32, %s1702_s20 }
  0xba   : > { %941 = vrot.lane.b32.xlu0 %v923_v16, %s1701_s10  ;;  %1610 = vmatpush.msrb.mxu3 %v1027_v20 }
  0xbc   : > { %1611 = vmatpush.msrb.mxu3 %v1026_v21 }
  0xc1   : > { %951 = vrot.lane.b32.xlu1 %v936_v47, %s1701_s10  ;;  %996 = vrot.lane.b32.xlu2 %v981_v48, %s1702_s20 }
  0xc2   : > { %990 = vrot.lane.b32.xlu0 %v973_v52, %s1702_s20 }
  0xc9   : > { %998 = vrot.lane.b32.xlu1 %v983_v36, %s1702_s20  ;;  %1183 = vrot.lane.b32.xlu2 %v1180_v61, %s1701_s10 }
  0xca   : > { %953 = vrot.lane.b32.xlu0 %v938_v2, %s1701_s10 }
  0xd1   : > { %1185 = vrot.lane.b32.xlu1 %v1182_v8, %s1701_s10  ;;  %1196 = vrot.lane.b32.xlu2 %v1193_v11, %s1702_s20 }
  0xd2   : > { %1194 = vrot.lane.b32.xlu0 %v1191_v12, %s1702_s20  ;;  %v2153_v12 = vld [vmem:[%s2216_s8] ss:$0 sm:$0xff] }
  0xf3   : > { %v993_v18 = vpop.permute.xlu2 %992 }
  0xfb   : > { %v944_v22 = vpop.permute.xlu2 %943 }
  0xfc   : > { %v1011_v29 = vsel %vm1008_vm5, %v1941_v30, %v944_v22 }
 0x103   : > { %v950_v32 = vpop.permute.xlu2 %949 }
 0x10a   : > { %v1038_v23 = vpop.permute.xlu1 %1037 }
 0x10b   : > { %v948_v24 = vpop.permute.xlu0 %947  ;;  %v1054_v37 = vsel %vm1008_vm5, %v1901_v63, %v1038_v23  ;;  %v1051_v63 = vpop.permute.xlu2 %1050 }
 0x10c   : > { %v1013_v25 = vsel %vm1008_vm5, %v1904_v0, %v948_v24  ;;  %v1014_v0 = vsel %vm1008_vm5, %v1920_v10, %v950_v32 }
 0x10d   : > { %v1022_v26 = vsel %vm1017_vm4, %v1013_v25, %v993_v18 }
 0x10e   : > { %1592 = vmatmul.msk.f32.vlgmr.msra.gmra.mxu2 %vm1062_vm6, %v1022_v26 }
 0x113   : > { %v989_v33 = vpop.permute.xlu1 %988  ;;  %v987_v45 = vpop.permute.xlu2 %986 }
 0x114   : > { %v1049_v16 = vpop.permute.xlu0 %1048  ;;  %v1020_v35 = vsel %vm1017_vm4, %v1011_v29, %v989_v33 }
 0x115   : > { %1573 = vmatmul.msk.f32.vlgmr.msra.gmra.mxu0 %vm1062_vm6, %v1020_v35  ;;  %v1056_v38 = vsel %vm1017_vm4, %v1054_v37, %v1049_v16 }
 0x116   : > { %1579 = vmatmul.msk.f32.vlgmr.msra.gmra.mxu3 %vm1062_vm6, %v1056_v38 }
 0x117   : > { %1612 = vmatpush.msra.mxu3 %v1591_v13 }
 0x119   : > { %1613 = vmatpush.msra.mxu3 %v1590_v14 }
 0x11b   : > { %v995_v30 = vpop.permute.xlu1 %994  ;;  %1614 = vmatpush.msra.mxu3 %v1589_v15  ;;  %v997_v51 = vpop.permute.xlu2 %996 }
 0x11c   : > { %v1040_v39 = vpop.permute.xlu0 %1039  ;;  %v1023_v34 = vsel %vm1017_vm4, %v1014_v0, %v995_v30 }
 0x11d   : > { %v1055_v40 = vsel %vm1008_vm5, %v1917_v9, %v1040_v39  ;;  %1593 = vmatmul.msk.f32.gmra.mxu2 %vm1062_vm6, %v1023_v34 }
 0x11e   : > { %v1057_v41 = vsel %vm1017_vm4, %v1055_v40, %v1051_v63 }
 0x11f   : > { %1580 = vmatmul.msk.f32.gmra.mxu3 %vm1062_vm6, %v1057_v41 }
 0x123   : > { %v940_v42 = vpop.permute.xlu1 %939  ;;  %v1184_v59 = vpop.permute.xlu2 %1183 }
 0x124   : > { %v985_v43 = vpop.permute.xlu0 %984  ;;  %v1009_v10 = vsel %vm1008_vm5, %v1970_v55, %v940_v42  ;;  %v1200_v1 = vsel %vm1008_vm5, %v2028_v49, %v1184_v59 }
 0x125   : > { %v1018_v44 = vsel %vm1017_vm4, %v1009_v10, %v985_v43 }
 0x126   : > { %1581 = vmatmul.msk.f32.vlgmr.msra.gmra.mxu1 %vm1062_vm6, %v1018_v44 }
 0x12b   : > { %v946_v46 = vpop.permute.xlu1 %945  ;;  %v1197_v36 = vpop.permute.xlu2 %1196 }
 0x12c   : > { %v942_v47 = vpop.permute.xlu0 %941  ;;  %v1012_v53 = vsel %vm1008_vm5, %v1944_v31, %v946_v46 }
 0x12d   : > { %v1010_v9 = vsel %vm1008_vm5, %v1973_v56, %v942_v47 }
 0x12e   : > { %v1019_v48 = vsel %vm1017_vm4, %v1010_v9, %v987_v45 }
 0x12f   : > { %1582 = vmatmul.msk.f32.gmra.mxu1 %vm1062_vm6, %v1019_v48 }
 0x133   : > { %v952_v52 = vpop.permute.xlu1 %951 }
 0x134   : > { %v991_v55 = vpop.permute.xlu0 %990  ;;  %v1015_v54 = vsel %vm1008_vm5, %v2005_v27, %v952_v52 }
 0x135   : > { %v1021_v57 = vsel %vm1017_vm4, %v1012_v53, %v991_v55  ;;  %v1024_v58 = vsel %vm1017_vm4, %v1015_v54, %v997_v51 }
 0x136   : > { %1574 = vmatmul.msk.f32.gmra.mxu0 %vm1062_vm6, %v1021_v57  ;;  %1587 = vmatmul.msk.f32.vlgmr.msrb.gmra.mxu3 %vm1062_vm6, %v1024_v58 }
 0x137   : > { %1583 = vmatmul.msk.f32.gmra.mxu1 %vm1062_vm6, %v1020_v35  ;;  %1594 = vmatmul.msk.f32.gmra.mxu2 %vm1062_vm6, %v1024_v58 }
 0x13b   : > { %v999_v56 = vpop.permute.xlu1 %998 }
 0x13c   : > { %v954_v60 = vpop.permute.xlu0 %953 }
 0x13d   : > { %v1016_v31 = vsel %vm1008_vm5, %v2008_v28, %v954_v60 }
 0x13e   : > { %1575 = vmatmul.msk.f32.gmra.mxu0 %vm1062_vm6, %v1022_v26  ;;  %v1025_v27 = vsel %vm1017_vm4, %v1016_v31, %v999_v56 }
 0x13f   : > { %1584 = vmatmul.msk.f32.gmra.mxu1 %vm1062_vm6, %v1021_v57  ;;  %1588 = vmatmul.msk.f32.gmra.mxu3 %vm1062_vm6, %v1025_v27 }
 0x140   : > { %1595 = vmatmul.msk.f32.gmra.mxu2 %vm1062_vm6, %v1025_v27 }
 0x143   : > { %v1186_v61 = vpop.permute.xlu1 %1185 }
 0x144   : > { %v1195_v2 = vpop.permute.xlu0 %1194  ;;  %v1201_v3 = vsel %vm1008_vm5, %v2031_v50, %v1186_v61 }
 0x145   : > { %v1202_v28 = vsel %vm1017_vm4, %v1200_v1, %v1195_v2  ;;  %v1203_v4 = vsel %vm1017_vm4, %v1201_v3, %v1197_v36 }
 0x146   : > { %1576 = vmatmul.msk.f32.gmra.mxu0 %vm1062_vm6, %v1023_v34 }
 0x147   : > { %1585 = vmatmul.msk.f32.gmra.mxu1 %vm1062_vm6, %v1022_v26  ;;  %1598 = vmatmul.msk.f32.vlgmr.msra.gmra.mxu3 %vm1062_vm6, %v1202_v28 }
 0x148   : > { %1596 = vmatmul.msk.f32.gmra.mxu2 %vm1062_vm6, %v1056_v38 }
 0x14e   : > { %1577 = vmatmul.msk.f32.gmra.mxu0 %vm1062_vm6, %v1024_v58 }
 0x14f   : > { %1586 = vmatmul.msk.f32.gmra.mxu1 %vm1062_vm6, %v1023_v34  ;;  %1599 = vmatmul.msk.f32.gmra.mxu3 %vm1062_vm6, %v1203_v4 }
 0x150   : > { %1597 = vmatmul.msk.f32.gmra.mxu2 %vm1062_vm6, %v1057_v41 }
 0x156   : > { %1578 = vmatmul.msk.f32.gmra.mxu0 %vm1062_vm6, %v1025_v27 }
 0x191   : > { %v1231_v8 = vpop.f32.mrf.mxu2 }
 0x192   : > { %v1104_v49 = vpop.f32.mrf.mxu0 }
 0x199   : > { %v1122_v13 = vpop.f32.mrf.mxu3 }
 0x1a0   : > { %v1234_v18 = vpop.f32.mrf.mxu2 }
 0x1a2   : > { %v1125_v17 = vpop.f32.mrf.mxu3 }
 0x1a3   : > { %v1151_v50 = vpop.f32.mrf.mxu1 }
 0x1a4   : > { %v1152_v5 = vadd.f32 %v1151_v50, %v1104_v49 }
 0x1a6   : > { %v1255_v11 = vadd.f32 %v1231_v8, %v1152_v5 }
 0x1a8   : > { %v1267_v14 = vmul.f32 %v2148_v7, %v1255_v11 }
 0x1aa   : > { %v1279_v15 = vadd.f32 %v2153_v12, %v1267_v14 }
 0x1ac   : > { %v1287_v62 = vmax.f32 %v1279_v15, 0.0  ;;  %v1154_v6 = vpop.f32.mrf.mxu1 }
 0x1ae   : > { %1295 = vst.msk [vmem:[%s2161_s28] sm:$0xff] %vm887_vm1, %v1287_v62 }
 0x1b3   : > { %v1107_v19 = vpop.f32.mrf.mxu0 }
 0x1b4   : > { %v1155_v20 = vadd.f32 %v1154_v6, %v1107_v19  ;;  %v1157_v21 = vpop.f32.mrf.mxu1 }
 0x1b6   : > { %v1256_v22 = vadd.f32 %v1234_v18, %v1155_v20 }
 0x1b8   : > { %v1268_v23 = vmul.f32 %v2148_v7, %v1256_v22 }
 0x1b9   : > { %v1169_v24 = vpop.f32.mrf.mxu3 }
 0x1ba   : > { %v1280_v25 = vadd.f32 %v2153_v12, %v1268_v23  ;;  %v1237_v26 = vpop.f32.mrf.mxu2  ;;  %v1170_v42 = vadd.f32 %v1169_v24, %v1122_v13 }
 0x1bb   : > { %v1110_v29 = vpop.f32.mrf.mxu0 }
 0x1bc   : > { %v1288_v32 = vmax.f32 %v1280_v25, 0.0  ;;  %v1158_v33 = vadd.f32 %v1157_v21, %v1110_v29  ;;  %v1160_v16 = vpop.f32.mrf.mxu1 }
 0x1be   : > { %1296 = vst.msk [vmem:[%s2161_s28 + $0x8] sm:$0xff] %vm887_vm1, %v1288_v32  ;;  %v1257_v37 = vadd.f32 %v1237_v26, %v1158_v33 }
 0x1c0   : > { %v1269_v35 = vmul.f32 %v2148_v7, %v1257_v37 }
 0x1c2   : > { %v1281_v38 = vadd.f32 %v2153_v12, %v1269_v35  ;;  %v1172_v0 = vpop.f32.mrf.mxu3 }
 0x1c3   : > { %v1240_v30 = vpop.f32.mrf.mxu2  ;;  %v1113_v39 = vpop.f32.mrf.mxu0  ;;  %v1173_v54 = vadd.f32 %v1172_v0, %v1125_v17 }
 0x1c4   : > { %v1289_v34 = vmax.f32 %v1281_v38, 0.0  ;;  %v1161_v63 = vadd.f32 %v1160_v16, %v1113_v39  ;;  %v1163_v43 = vpop.f32.mrf.mxu1 }
 0x1c6   : > { %1297 = vst.msk [vmem:[%s2161_s28 + $0x10] sm:$0xff] %vm887_vm1, %v1289_v34  ;;  %v1258_v40 = vadd.f32 %v1240_v30, %v1161_v63 }
 0x1c8   : > { %v1270_v41 = vmul.f32 %v2148_v7, %v1258_v40 }
 0x1ca   : > { %v1282_v10 = vadd.f32 %v2153_v12, %v1270_v41  ;;  %v1249_v44 = vpop.f32.mrf.mxu3 }
 0x1cb   : > { %v1243_v45 = vpop.f32.mrf.mxu2  ;;  %v1261_v46 = vadd.f32 %v1249_v44, %v1170_v42  ;;  %v1116_v47 = vpop.f32.mrf.mxu0 }
 0x1cc   : > { %v1290_v9 = vmax.f32 %v1282_v10, 0.0  ;;  %v1164_v48 = vadd.f32 %v1163_v43, %v1116_v47  ;;  %v1166_v59 = vpop.f32.mrf.mxu1 }
 0x1cd   : > { %v1273_v51 = vmul.f32 %v2148_v7, %v1261_v46 }
 0x1ce   : > { %1298 = vst.msk [vmem:[%s2161_s28 + $0x18] sm:$0xff] %vm887_vm1, %v1290_v9  ;;  %v1259_v52 = vadd.f32 %v1243_v45, %v1164_v48 }
 0x1cf   : > { %v1285_v53 = vadd.f32 %v2153_v12, %v1273_v51 }
 0x1d0   : > { %v1271_v55 = vmul.f32 %v2148_v7, %v1259_v52 }
 0x1d1   : > { %v1293_v57 = vmax.f32 %v1285_v53, 0.0 }
 0x1d2   : > { %v1283_v58 = vadd.f32 %v2153_v12, %v1271_v55  ;;  %v1252_v56 = vpop.f32.mrf.mxu3 }
 0x1d3   : > { %1301 = vst.msk [vmem:[%s2161_s28 + $0x30] sm:$0xff] %vm887_vm1, %v1293_v57  ;;  %v1262_v60 = vadd.f32 %v1252_v56, %v1173_v54  ;;  %v1119_v31 = vpop.f32.mrf.mxu0  ;;  %v1246_v1 = vpop.f32.mrf.mxu2 }
 0x1d4   : > { %v1291_v27 = vmax.f32 %v1283_v58, 0.0  ;;  %v1167_v61 = vadd.f32 %v1166_v59, %v1119_v31 }
 0x1d5   : > { %v1274_v36 = vmul.f32 %v2148_v7, %v1262_v60 }
 0x1d6   : > { %1299 = vst.msk [vmem:[%s2161_s28 + $0x20] sm:$0xff] %vm887_vm1, %v1291_v27  ;;  %v1260_v2 = vadd.f32 %v1246_v1, %v1167_v61 }
 0x1d7   : > { %v1286_v3 = vadd.f32 %v2153_v12, %v1274_v36 }
 0x1d8   : > { %v1272_v28 = vmul.f32 %v2148_v7, %v1260_v2 }
 0x1d9   : > { %v1294_v4 = vmax.f32 %v1286_v3, 0.0 }
 0x1da   : > { %v1284_v49 = vadd.f32 %v2153_v12, %v1272_v28 }
 0x1db   : > { %1302 = vst.msk [vmem:[%s2161_s28 + $0x38] sm:$0xff] %vm887_vm1, %v1294_v4 }
 0x1dc   : > { %v1292_v50 = vmax.f32 %v1284_v49, 0.0 }
 0x1de   : > { %1300 = vst.msk [vmem:[%s2161_s28 + $0x28] sm:$0xff] %vm887_vm1, %v1292_v50 }
 0x1df PF: > { %s19_s13 = sadd.s32 1, %s1698_s13   ;;  %s2219_s30 = smov %s1690_s11 }
 0x1e0   : > { %p16_p12 = scmp.ge.s32.totalorder %s19_s13, 10   ;;  %s2220_s10 = smov %s1694_s12 }
 0x1e1   : > { %s2221_s11 = smov %s2224_s14  ;;  %s2222_s12 = smov %s2228_s15 }
 0x1e2   :  { %18 = sbr.rel (!%p16_p12) target bundleno = 3 (0x3), region = 103 }

// kernel: unet_decoder_forward.5
= control target key start
LH: loop header
LB: loop body
LE: loop exit
PB: predicated region body
PF: predicated region fallthrough
CT: control target
= control target key end

     0   :  { %s1244_s21 = smov 0   ;;  %s1246_s22 = smov 0   ;;  %s1595_s0 = inlined_call_operand.vmem [shape: f32[2,16,16,4], index: 0, kind: input, shape index: {}, may-alias: {0,1,2}]   ;;  %s1596_s1 = inlined_call_operand.vmem [shape: f32[2,16,16,4], index: 1, kind: input, shape index: {}, may-alias: {0,1,2}]   ;;  %s1597_s2 = inlined_call_operand.vmem [shape: f32[2,16,16,4], index: 2, kind: input, shape index: {}, may-alias: {0,1,2}]   ;;  %s1598_s3 = inlined_call_operand.vmem [shape: f32[3,12,4], index: 3, kind: input, shape index: {}]   ;;  %s1599_s4 = inlined_call_operand.vmem [shape: f32[1,4], index: 4, kind: input, shape index: {}]   ;;  %s1600_s5 = inlined_call_operand.vmem [shape: f32[1,4], index: 5, kind: input, shape index: {}]   ;;  %s1601_s6 = inlined_call_operand.vmem [shape: f32[2,16,16,4], index: 6, kind: output, shape index: {}]  }
   0x1   :  { %s1248_s23 = smov 0   ;;  %s1250_s24 = smov 0  }
   0x2   :  { %s1252_s25 = smov 0  }
   0x3 LB: > { %s25_s26 = sadd.s32 1, %s1197_s23  ;;  %s28_s27 = sadd.s32 1, %s1201_s24  ;;  %s1205_s25 = sphi %s1252_s25, %s16_s25   ;;  %s1201_s24 = sphi %s1250_s24, %s1606_s24   ;;  %s1197_s23 = sphi %s1248_s23, %s1605_s23   ;;  %s1193_s22 = sphi %s1246_s22, %s1604_s22   ;;  %s1189_s21 = sphi %s1244_s21, %s1603_s21  }
   0x4   : > { %p26_p0 = scmp.ge.s32.totalorder %s25_s26, 4  ;;  %p1056_p1 = scmp.ge.s32.totalorder %s1205_s25, 1 }
   0x5   : > { %p298_p2 = scmp.lt.s32.totalorder %s1205_s25, 9 }
   0x6   : > { %s1608_s26 = smov (%p26_p0, %s25_s26), 0  ;;  %s1610_s27 = smov (!%p26_p0, %s28_s27), %s1201_s24 }
   0x7   : > { %p299_p3 = pnand %p1056_p1, %p298_p2  ;;  %p30_p4 = scmp.ge.s32.totalorder %s1610_s27, 2 }
   0x8   : > { %s1277_s28 = sshll.u32 (!%p299_p3), %s1189_s21, 2  ;;  %p365_p5 = scmp.lt.s32.totalorder (!%p299_p3), %s1193_s22, 1 }
   0x9   : > { %s1612_s27 = smov (%p30_p4, %s1610_s27), 0  ;;  %302 = sbr.rel (%p299_p3) target bundleno = 354 (0x162), region = 44 }
   0xa   : > { %p367_p6 = scmp.lt.s32.totalorder (!%p299_p3), %s1277_s28, 15  ;;  %s1062_s8 = sadd.s32 (!%p299_p3), 4294967295, %s1277_s28 }
   0xb   : > { %p377_p7 = scmp.gt.s32.totalorder (!%p299_p3), %s1062_s8, 0  ;;  %p1063_p8 = scmp.lt.s32.totalorder (!%p299_p3), %s1062_s8, 15 }
   0xc   : > { %p420_p9 = scmp.eq.s32.totalorder (!%p299_p3), %s1189_s21, 0  ;;  %s393_s12 = sadd.s32 (!%p299_p3), 4, %s1277_s28 }
   0xd   : > { %p1366_p10 = scmp.lt.s32.totalorder (!%p299_p3), %s393_s12, 15  ;;  %p421_p11 = scmp.eq.s32.totalorder (!%p299_p3), %s1189_s21, 3 }
   0xe   : > { %s1614_s22 = smov (!%p365_p5, %s1193_s22), 1  ;;  %vm458_vm0 = vcmask 1040384   ;;  %vm560_vm1 = vcmask 1045504   ;;  %vm515_vm2 = vcmask 1046528   ;;  %vm681_vm3 = vcmask 1043456  }
   0xf   : > { %s368_s29 = scalar_select %p367_p6, %s1277_s28, 15  ;;  %vm605_vm4 = vcmask 31744   ;;  %vm614_vm5 = vcmask 64512   ;;  %vm656_vm6 = vcmask 97280  }
  0x10   : > { %s1281_s30 = sshll.u32 %s1614_s22, 5  ;;  %s1207_s22 = smov 8  }
  0x11   : > { %s1058_s7 = sshll.u32 %s368_s29, 1  ;;  %s1208_s29 = smov 4  }
  0x12   : > { %s1285_s9 = sadd.s32 %s1281_s30, %s1058_s7  ;;  %s1618_s12 = smov (!%p1366_p10, %s393_s12), 15 }
  0x13   : > { %s1060_s10 = sshll.u32 %s1285_s9, 3  ;;  %s1620_s12 = smov (!%p1366_p10, %s1618_s12), 15 }
  0x14   : > { %s1293_s13 = scalar_lea.vmem %s1595_s0, %s1060_s10  ;;  %s1075_s21 = sshll.u32 %s1620_s12, 1 }
  0x15   : > { %v424_v0 = vld [vmem:[%s1293_s13 + $0x10] sm:$0xff]  ;;  %v425_v1 = vld [vmem:[%s1293_s13 + $0x18] sm:$0xff]  ;;  %s378_s14 = scalar_select %p377_p7, %s1062_s8, 0  ;;  %v422_v8 = vld [vmem:[%s1293_s13] sm:$0xff] }
  0x16   : > { %v428_v2 = vld [vmem:[%s1293_s13 + $0x30] sm:$0xff]  ;;  %v465_v3 = vrot.slane %v424_v0, 7  ;;  %v466_v4 = vrot.slane %v425_v1, 7  ;;  %v1300_v5 = vld [vmem:[%s1293_s13 + $0x38] sm:$0xff]  ;;  %s434_s15 = scalar_select %p420_p9, 1, 0 }
  0x17   : > { %v471_v6 = vrot.slane %v428_v2, 7  ;;  %v472_v7 = vrot.slane %v1300_v5, 7  ;;  %s1616_s14 = smov (!%p1063_p8, %s378_s14), 15  ;;  %v1306_v9 = vld [vmem:[%s1293_s13 + $0x8] sm:$0xff]  ;;  %v462_v13 = vrot.slane %v422_v8, 7  ;;  %v426_v62 = vld [vmem:[%s1293_s13 + $0x20] sm:$0xff]  ;;  %s1548_s7 = scalar_lea.vmem %s1601_s6, %s1060_s10 }
  0x18   : > { %v1309_v10 = vsel %vm458_vm0, %v465_v3, %v466_v4  ;;  %v1312_v11 = vsel %vm458_vm0, 0.0, %v465_v3  ;;  %s435_s16 = scvt.s32.f32 %s434_s15  ;;  %s1068_s17 = sshll.u32 %s1616_s14, 1  ;;  %v463_v19 = vrot.slane %v1306_v9, 7  ;;  %v503_v40 = vsel %vm458_vm0, %v466_v4, 0.0  ;;  %v427_v63 = vld [vmem:[%s1293_s13 + $0x28] sm:$0xff] }
  0x19   : > { %v1315_v12 = vsel %vm458_vm0, 0.0, %v471_v6  ;;  %v571_v14 = vrot.slane %v1312_v11, 2  ;;  %v572_v15 = vrot.slane %v1309_v10, 2  ;;  %v526_v16 = vrot.slane %v1312_v11, 1  ;;  %s385_s18 = sadd.s32 %s1068_s17, %s1281_s30  ;;  %s402_s15 = sadd.s32 %s1075_s21, %s1281_s30 }
  0x1a   : > { %v527_v17 = vrot.slane %v1309_v10, 1  ;;  %v1322_v18 = vsel %vm458_vm0, %v471_v6, %v472_v7  ;;  %s436_s19 = ssub.f32 1.0, %s435_s16  ;;  %s1070_s20 = sshll.u32 %s385_s18, 3  ;;  %v638_v22 = vrot.slane %v1315_v12, 2  ;;  %v627_v23 = vrot.slane %v1315_v12, 1 }
  0x1b   : > { %v573_v20 = vsel %vm560_vm1, %v571_v14, %v572_v15  ;;  %s387_s11 = scalar_lea.vmem %s1596_s1, %s1070_s20  ;;  %v639_v25 = vrot.slane %v1322_v18, 2  ;;  %v628_v26 = vrot.slane %v1322_v18, 1  ;;  %v1340_v29 = vsel %vm458_vm0, %v462_v13, %v463_v19  ;;  %s1077_s17 = sshll.u32 %s402_s15, 3 }
  0x1c   : > { %v528_v21 = vsel %vm515_vm2, %v526_v16, %v527_v17  ;;  %589 = vrot.lane.b32.xlu1 %v573_v20, %s1207_s22  ;;  %v437_v24 = vstv %s436_s19  ;;  %v430_v27 = vld [vmem:[%s387_s11] sm:$0xff]  ;;  %v431_v28 = vld [vmem:[%s387_s11 + $0x8] sm:$0xff]  ;;  %v1343_v30 = vsel %vm458_vm0, 0.0, %v462_v13  ;;  %v522_v34 = vrot.slane %v1340_v29, 1  ;;  %s440_s28 = scalar_select %p421_p11, 1, 0 }
  0x1d   : > { %544 = vrot.lane.b32.xlu0 %v528_v21, %s1208_s29  ;;  %v438_v31 = vmul.f32 %v437_v24, %v430_v27  ;;  %v439_v32 = vmul.f32 %v437_v24, %v431_v28  ;;  %v521_v33 = vrot.slane %v1343_v30, 1  ;;  %v640_v38 = vsel %vm560_vm1, %v638_v22, %v639_v25  ;;  %s404_s19 = scalar_lea.vmem %s1597_s2, %s1077_s17 }
  0x1e   : > { %v629_v39 = vsel %vm515_vm2, %v627_v23, %v628_v26  ;;  %v529_v43 = vrot.slane %v503_v40, 1  ;;  %v566_v46 = vrot.slane %v1343_v30, 2  ;;  %v567_v47 = vrot.slane %v1340_v29, 2  ;;  %s441_s16 = scvt.s32.f32 %s440_s28  ;;  %v432_v16 = vld [vmem:[%s404_s19] sm:$0xff]  ;;  %v433_v20 = vld [vmem:[%s404_s19 + $0x8] sm:$0xff] }
  0x1f   : > { %v459_v35 = vrot.slane %v438_v31, 7  ;;  %v460_v36 = vrot.slane %v439_v32, 7  ;;  %v523_v37 = vsel %vm515_vm2, %v521_v33, %v522_v34  ;;  %v505_v51 = vsel %vm458_vm0, %v472_v7, 0.0 }
  0x20   : > { %540 = vrot.lane.b32.xlu2 %v523_v37, %s1208_s29  ;;  %v530_v48 = vsel %vm515_vm2, %v527_v17, %v529_v43  ;;  %v568_v50 = vsel %vm560_vm1, %v566_v46, %v567_v47  ;;  %v630_v54 = vrot.slane %v505_v51, 1  ;;  %v574_v55 = vrot.slane %v503_v40, 2  ;;  %s442_s13 = ssub.f32 1.0, %s441_s16 }
  0x21   : > { %v1353_v41 = vsel %vm458_vm0, %v459_v35, %v460_v36  ;;  %v1356_v42 = vsel %vm458_vm0, 0.0, %v459_v35  ;;  %v501_v59 = vsel %vm458_vm0, %v460_v36, 0.0  ;;  %v502_v60 = vsel %vm458_vm0, %v463_v19, 0.0 }
  0x22   : > { %v561_v44 = vrot.slane %v1356_v42, 2  ;;  %v562_v45 = vrot.slane %v1353_v41, 2  ;;  %v516_v52 = vrot.slane %v1356_v42, 1  ;;  %v517_v53 = vrot.slane %v1353_v41, 1 }
  0x23   : > { %v631_v57 = vsel %vm515_vm2, %v628_v26, %v630_v54  ;;  %v575_v58 = vsel %vm560_vm1, %v572_v15, %v574_v55  ;;  %v641_v61 = vrot.slane %v505_v51, 2  ;;  %v519_v0 = vrot.slane %v501_v59, 1  ;;  %v1083_v54 = vld [vmem:[%s1598_s3 + $0x18] sm:$0xf]  ;;  %v1082_v55 = vld [vmem:[%s1598_s3 + $0x10] sm:$0xff] }
  0x24   : > { %643 = vrot.lane.b32.xlu1 %v640_v38, %s1207_s22  ;;  %v563_v49 = vsel %vm560_vm1, %v561_v44, %v562_v45  ;;  %v518_v56 = vsel %vm515_vm2, %v516_v52, %v517_v53  ;;  %v524_v1 = vrot.slane %v502_v60, 1  ;;  %v468_v2 = vrot.slane %v426_v62, 7  ;;  %v1103_v52 = vld [vmem:[%s1598_s3 + $0x28] sm:$0xf]  ;;  %1117 = vmatpush.msk.msra.mxu3 %vm681_vm3, %v1083_v54 }
  0x25   : > { %632 = vrot.lane.b32.xlu0 %v629_v39, %s1208_s29  ;;  %v469_v3 = vrot.slane %v427_v63, 7  ;;  %v642_v4 = vsel %vm560_vm1, %v639_v25, %v641_v61  ;;  %v520_v5 = vsel %vm515_vm2, %v517_v53, %v519_v0  ;;  %v564_v9 = vrot.slane %v501_v59, 2  ;;  %1104 = vmatpush.msk.msra.mxu2 %vm681_vm3, %v1103_v52  ;;  %v1102_v53 = vld [vmem:[%s1598_s3 + $0x20] sm:$0xff] }
  0x26   : > { %v525_v6 = vsel %vm515_vm2, %v522_v34, %v524_v1  ;;  %v1404_v8 = vsel %vm458_vm0, 0.0, %v468_v2  ;;  %v569_v13 = vrot.slane %v502_v60, 2  ;;  %v443_v17 = vstv %s442_s13  ;;  %1084 = vmatpush.msk.msra.mxu0 %vm681_vm3, %v1083_v54  ;;  %1118 = vmatpush.msra.mxu3 %v1082_v55 }
  0x27   : > { %v1401_v7 = vsel %vm458_vm0, %v468_v2, %v469_v3  ;;  %v531_v14 = vrot.slane %v1404_v8, 1  ;;  %v565_v19 = vsel %vm560_vm1, %v562_v45, %v564_v9  ;;  %v444_v23 = vmul.f32 %v443_v17, %v432_v16  ;;  %831 = vmatpush.msra.mxu2 %v1102_v53 }
  0x28   : > { %546 = vrot.lane.b32.xlu2 %v530_v48, %s1208_s29  ;;  %v532_v15 = vrot.slane %v1401_v7, 1  ;;  %v570_v21 = vsel %vm560_vm1, %v567_v47, %v569_v13  ;;  %v504_v24 = vsel %vm458_vm0, %v469_v3, 0.0  ;;  %v445_v25 = vmul.f32 %v443_v17, %v433_v20  ;;  %700 = vmatpush.msra.mxu0 %v1082_v55 }
  0x29   : > { %v576_v26 = vrot.slane %v1404_v8, 2  ;;  %v577_v27 = vrot.slane %v1401_v7, 2  ;;  %v534_v28 = vrot.slane %v504_v24, 1  ;;  %v579_v31 = vrot.slane %v504_v24, 2 }
  0x2a   : > { %v533_v22 = vsel %vm515_vm2, %v531_v14, %v532_v15  ;;  %v474_v32 = vrot.slane %v444_v23, 7  ;;  %v475_v33 = vrot.slane %v445_v25, 7 }
  0x2b   : > { %v578_v34 = vsel %vm560_vm1, %v576_v26, %v577_v27  ;;  %v535_v35 = vsel %vm515_vm2, %v532_v15, %v534_v28  ;;  %v580_v36 = vsel %vm560_vm1, %v577_v27, %v579_v31 }
  0x2c   : > { %585 = vrot.lane.b32.xlu1 %v568_v50, %s1207_s22  ;;  %v1426_v37 = vsel %vm458_vm0, 0.0, %v474_v32  ;;  %v1430_v38 = vsel %vm458_vm0, %v474_v32, %v475_v33  ;;  %v506_v39 = vsel %vm458_vm0, %v475_v33, 0.0 }
  0x2d   : > { %581 = vrot.lane.b32.xlu0 %v563_v49, %s1207_s22  ;;  %v778_v40 = vrot.slane %v1426_v37, 1  ;;  %v779_v43 = vrot.slane %v1430_v38, 1  ;;  %v789_v44 = vrot.slane %v1426_v37, 2  ;;  %v790_v45 = vrot.slane %v1430_v38, 2 }
  0x2e   : > { %v781_v46 = vrot.slane %v506_v39, 1  ;;  %v792_v50 = vrot.slane %v506_v39, 2 }
  0x2f   : > { %v780_v47 = vsel %vm515_vm2, %v778_v40, %v779_v43  ;;  %v791_v48 = vsel %vm560_vm1, %v789_v44, %v790_v45 }
  0x30   : > { %536 = vrot.lane.b32.xlu2 %v518_v56, %s1208_s29  ;;  %v782_v49 = vsel %vm515_vm2, %v779_v43, %v781_v46  ;;  %v793_v51 = vsel %vm560_vm1, %v790_v45, %v792_v50  ;;  %v624_v56 = vld [vmem:[%s1598_s3 + $0x8] sm:$0xf] }
  0x31   : > { %1093 = vmatpush.msk.msra.mxu1 %vm681_vm3, %v624_v56  ;;  %1119 = vmatpush.msk.msrb.mxu3 %vm681_vm3, %v624_v56 }
  0x34   : > { %591 = vrot.lane.b32.xlu1 %v575_v58, %s1207_s22 }
  0x35   : > { %634 = vrot.lane.b32.xlu0 %v631_v57, %s1208_s29  ;;  %v623_v57 = vld [vmem:[%s1598_s3] sm:$0xff] }
  0x36   : > { %750 = vmatpush.msra.mxu1 %v623_v57  ;;  %1120 = vmatpush.msrb.mxu3 %v623_v57 }
  0x38   : > { %645 = vrot.lane.b32.xlu2 %v642_v4, %s1207_s22 }
  0x3c   : > { %542 = vrot.lane.b32.xlu1 %v525_v6, %s1208_s29 }
  0x3d   : > { %538 = vrot.lane.b32.xlu0 %v520_v5, %s1208_s29 }
  0x40   : > { %583 = vrot.lane.b32.xlu2 %v565_v19, %s1207_s22 }
  0x44   : > { %548 = vrot.lane.b32.xlu1 %v533_v22, %s1208_s29 }
  0x45   : > { %587 = vrot.lane.b32.xlu0 %v570_v21, %s1207_s22 }
  0x48   : > { %593 = vrot.lane.b32.xlu2 %v578_v34, %s1207_s22 }
  0x4c   : > { %595 = vrot.lane.b32.xlu1 %v580_v36, %s1207_s22 }
  0x4d   : > { %550 = vrot.lane.b32.xlu0 %v535_v35, %s1208_s29 }
  0x50   : > { %783 = vrot.lane.b32.xlu2 %v780_v47, %s1208_s29 }
  0x54   : > { %785 = vrot.lane.b32.xlu1 %v782_v49, %s1208_s29 }
  0x55   : > { %794 = vrot.lane.b32.xlu0 %v791_v48, %s1207_s22  ;;  %v1539_v48 = vld [vmem:[%s1600_s5] ss:$0 sm:$0xff] }
  0x58   : > { %796 = vrot.lane.b32.xlu2 %v793_v51, %s1207_s22 }
  0x7a   : > { %v541_v58 = vpop.permute.xlu2 %540 }
  0x7b   : > { %v608_v5 = vsel %vm605_vm4, %v1343_v30, %v541_v58 }
  0x82   : > { %v547_v62 = vpop.permute.xlu2 %546 }
  0x83   : > { %v611_v15 = vsel %vm605_vm4, %v1309_v10, %v547_v62 }
  0x8a   : > { %v537_v4 = vpop.permute.xlu2 %536 }
  0x8e   : > { %v590_v59 = vpop.permute.xlu1 %589 }
  0x8f   : > { %v545_v60 = vpop.permute.xlu0 %544 }
  0x90   : > { %v610_v61 = vsel %vm605_vm4, %v1312_v11, %v545_v60  ;;  %v606_v11 = vsel %vm605_vm4, %v1356_v42, %v537_v4 }
  0x91   : > { %v619_v63 = vsel %vm614_vm5, %v610_v61, %v590_v59 }
  0x92   : > { %1105 = vmatmul.msk.f32.vlgmr.msra.gmra.mxu2 %vm656_vm6, %v619_v63  ;;  %v646_v14 = vpop.permute.xlu2 %645 }
  0x96   : > { %v644_v0 = vpop.permute.xlu1 %643 }
  0x97   : > { %v633_v1 = vpop.permute.xlu0 %632 }
  0x98   : > { %v649_v2 = vsel %vm605_vm4, %v1315_v12, %v633_v1 }
  0x99   : > { %v651_v3 = vsel %vm614_vm5, %v649_v2, %v644_v0 }
  0x9a   : > { %1091 = vmatmul.msk.f32.vlgmr.msra.gmra.mxu3 %vm656_vm6, %v651_v3  ;;  %v584_v20 = vpop.permute.xlu2 %583 }
  0x9b   : > { %1121 = vmatpush.msk.msra.mxu3 %vm681_vm3, %v1103_v52 }
  0x9d   : > { %1122 = vmatpush.msra.mxu3 %v1102_v53 }
  0x9e   : > { %v586_v9 = vpop.permute.xlu1 %585 }
  0x9f   : > { %v582_v6 = vpop.permute.xlu0 %581  ;;  %v617_v13 = vsel %vm614_vm5, %v608_v5, %v586_v9 }
  0xa0   : > { %v615_v12 = vsel %vm614_vm5, %v606_v11, %v582_v6  ;;  %1085 = vmatmul.msk.f32.vlgmr.msra.gmra.mxu0 %vm656_vm6, %v617_v13 }
  0xa1   : > { %1094 = vmatmul.msk.f32.vlgmr.msra.gmra.mxu1 %vm656_vm6, %v615_v12 }
  0xa2   : > { %v594_v24 = vpop.permute.xlu2 %593 }
  0xa6   : > { %v592_v42 = vpop.permute.xlu1 %591 }
  0xa7   : > { %v635_v16 = vpop.permute.xlu0 %634  ;;  %v620_v30 = vsel %vm614_vm5, %v611_v15, %v592_v42 }
  0xa8   : > { %v650_v17 = vsel %vm605_vm4, %v1322_v18, %v635_v16  ;;  %1106 = vmatmul.msk.f32.gmra.mxu2 %vm656_vm6, %v620_v30 }
  0xa9   : > { %v652_v19 = vsel %vm614_vm5, %v650_v17, %v646_v14 }
  0xaa   : > { %1092 = vmatmul.msk.f32.gmra.mxu3 %vm656_vm6, %v652_v19  ;;  %v784_v33 = vpop.permute.xlu2 %783 }
  0xab   : > { %v800_v34 = vsel %vm605_vm4, %v1426_v37, %v784_v33 }
  0xae   : > { %v543_v22 = vpop.permute.xlu1 %542 }
  0xaf   : > { %v539_v21 = vpop.permute.xlu0 %538  ;;  %v609_v18 = vsel %vm605_vm4, %v1340_v29, %v543_v22 }
  0xb0   : > { %v607_v23 = vsel %vm605_vm4, %v1353_v41, %v539_v21 }
  0xb1   : > { %v616_v10 = vsel %vm614_vm5, %v607_v23, %v584_v20 }
  0xb2   : > { %1095 = vmatmul.msk.f32.gmra.mxu1 %vm656_vm6, %v616_v10  ;;  %v797_v40 = vpop.permute.xlu2 %796 }
  0xb6   : > { %v549_v26 = vpop.permute.xlu1 %548 }
  0xb7   : > { %v588_v25 = vpop.permute.xlu0 %587  ;;  %v612_v27 = vsel %vm605_vm4, %v1404_v8, %v549_v26 }
  0xb8   : > { %v618_v28 = vsel %vm614_vm5, %v609_v18, %v588_v25  ;;  %v621_v31 = vsel %vm614_vm5, %v612_v27, %v594_v24 }
  0xb9   : > { %1086 = vmatmul.msk.f32.gmra.mxu0 %vm656_vm6, %v618_v28  ;;  %1100 = vmatmul.msk.f32.vlgmr.msrb.gmra.mxu3 %vm656_vm6, %v621_v31 }
  0xba   : > { %1096 = vmatmul.msk.f32.gmra.mxu1 %vm656_vm6, %v617_v13  ;;  %1107 = vmatmul.msk.f32.gmra.mxu2 %vm656_vm6, %v621_v31 }
  0xbe   : > { %v596_v32 = vpop.permute.xlu1 %595 }
  0xbf   : > { %v551_v41 = vpop.permute.xlu0 %550 }
  0xc0   : > { %v613_v29 = vsel %vm605_vm4, %v1401_v7, %v551_v41 }
  0xc1   : > { %1087 = vmatmul.msk.f32.gmra.mxu0 %vm656_vm6, %v619_v63  ;;  %v622_v8 = vsel %vm614_vm5, %v613_v29, %v596_v32 }
  0xc2   : > { %1097 = vmatmul.msk.f32.gmra.mxu1 %vm656_vm6, %v618_v28  ;;  %1101 = vmatmul.msk.f32.gmra.mxu3 %vm656_vm6, %v622_v8 }
  0xc3   : > { %1108 = vmatmul.msk.f32.gmra.mxu2 %vm656_vm6, %v622_v8 }
  0xc6   : > { %v786_v7 = vpop.permute.xlu1 %785 }
  0xc7   : > { %v795_v35 = vpop.permute.xlu0 %794  ;;  %v801_v39 = vsel %vm605_vm4, %v1430_v38, %v786_v7  ;;  %v1534_v38 = vld [vmem:[%s1599_s4] ss:$0 sm:$0xff] }
  0xc8   : > { %v802_v36 = vsel %vm614_vm5, %v800_v34, %v795_v35  ;;  %v803_v43 = vsel %vm614_vm5, %v801_v39, %v797_v40 }
  0xc9   : > { %1088 = vmatmul.msk.f32.gmra.mxu0 %vm656_vm6, %v620_v30 }
  0xca   : > { %1098 = vmatmul.msk.f32.gmra.mxu1 %vm656_vm6, %v619_v63  ;;  %1111 = vmatmul.msk.f32.vlgmr.msra.gmra.mxu3 %vm656_vm6, %v802_v36 }
  0xcb   : > { %1109 = vmatmul.msk.f32.gmra.mxu2 %vm656_vm6, %v651_v3 }
  0xd1   : > { %1089 = vmatmul.msk.f32.gmra.mxu0 %vm656_vm6, %v621_v31 }
  0xd2   : > { %1099 = vmatmul.msk.f32.gmra.mxu1 %vm656_vm6, %v620_v30  ;;  %1112 = vmatmul.msk.f32.gmra.mxu3 %vm656_vm6, %v803_v43 }
  0xd3   : > { %1110 = vmatmul.msk.f32.gmra.mxu2 %vm656_vm6, %v652_v19 }
  0xd9   : > { %1090 = vmatmul.msk.f32.gmra.mxu0 %vm656_vm6, %v622_v8 }
 0x115   : > { %v833_v46 = vpop.f32.mrf.mxu2 }
 0x11d   : > { %v702_v37 = vpop.f32.mrf.mxu0  ;;  %v720_v52 = vpop.f32.mrf.mxu3 }
 0x11e   : > { %v752_v44 = vpop.f32.mrf.mxu1 }
 0x11f   : > { %v753_v45 = vadd.f32 %v752_v44, %v702_v37 }
 0x121   : > { %v857_v47 = vadd.f32 %v833_v46, %v753_v45 }
 0x123   : > { %v869_v49 = vmul.f32 %v1534_v38, %v857_v47 }
 0x125   : > { %v881_v50 = vadd.f32 %v1539_v48, %v869_v49 }
 0x127   : > { %v889_v51 = vmax.f32 %v881_v50, 0.0 }
 0x129   : > { %897 = vst.msk [vmem:[%s1548_s7] sm:$0xff] %vm605_vm4, %v889_v51 }
 0x12b   : > { %v836_v55 = vpop.f32.mrf.mxu2 }
 0x12d   : > { %v723_v54 = vpop.f32.mrf.mxu3 }
 0x12f   : > { %v755_v53 = vpop.f32.mrf.mxu1 }
 0x136   : > { %v705_v56 = vpop.f32.mrf.mxu0 }
 0x137   : > { %v756_v57 = vadd.f32 %v755_v53, %v705_v56  ;;  %v758_v58 = vpop.f32.mrf.mxu1 }
 0x139   : > { %v858_v59 = vadd.f32 %v836_v55, %v756_v57 }
 0x13b   : > { %v870_v60 = vmul.f32 %v1534_v38, %v858_v59 }
 0x13c   : > { %v770_v62 = vpop.f32.mrf.mxu3 }
 0x13d   : > { %v882_v61 = vadd.f32 %v1539_v48, %v870_v60  ;;  %v839_v63 = vpop.f32.mrf.mxu2  ;;  %v771_v42 = vadd.f32 %v770_v62, %v720_v52 }
 0x13e   : > { %v708_v0 = vpop.f32.mrf.mxu0 }
 0x13f   : > { %v890_v1 = vmax.f32 %v882_v61, 0.0  ;;  %v759_v2 = vadd.f32 %v758_v58, %v708_v0  ;;  %v761_v4 = vpop.f32.mrf.mxu1 }
 0x141   : > { %898 = vst.msk [vmem:[%s1548_s7 + $0x8] sm:$0xff] %vm605_vm4, %v890_v1  ;;  %v859_v3 = vadd.f32 %v839_v63, %v759_v2 }
 0x143   : > { %v871_v11 = vmul.f32 %v1534_v38, %v859_v3 }
 0x145   : > { %v883_v5 = vadd.f32 %v1539_v48, %v871_v11  ;;  %v773_v6 = vpop.f32.mrf.mxu3 }
 0x146   : > { %v842_v9 = vpop.f32.mrf.mxu2  ;;  %v711_v13 = vpop.f32.mrf.mxu0  ;;  %v774_v27 = vadd.f32 %v773_v6, %v723_v54 }
 0x147   : > { %v891_v12 = vmax.f32 %v883_v5, 0.0  ;;  %v762_v14 = vadd.f32 %v761_v4, %v711_v13  ;;  %v764_v17 = vpop.f32.mrf.mxu1 }
 0x149   : > { %899 = vst.msk [vmem:[%s1548_s7 + $0x10] sm:$0xff] %vm605_vm4, %v891_v12  ;;  %v860_v15 = vadd.f32 %v842_v9, %v762_v14 }
 0x14b   : > { %v872_v16 = vmul.f32 %v1534_v38, %v860_v15 }
 0x14d   : > { %v884_v30 = vadd.f32 %v1539_v48, %v872_v16  ;;  %v851_v19 = vpop.f32.mrf.mxu3 }
 0x14e   : > { %v845_v20 = vpop.f32.mrf.mxu2  ;;  %v863_v21 = vadd.f32 %v851_v19, %v771_v42  ;;  %v714_v22 = vpop.f32.mrf.mxu0 }
 0x14f   : > { %v892_v23 = vmax.f32 %v884_v30, 0.0  ;;  %v765_v10 = vadd.f32 %v764_v17, %v714_v22  ;;  %v767_v32 = vpop.f32.mrf.mxu1 }
 0x150   : > { %v875_v24 = vmul.f32 %v1534_v38, %v863_v21 }
 0x151   : > { %900 = vst.msk [vmem:[%s1548_s7 + $0x18] sm:$0xff] %vm605_vm4, %v892_v23  ;;  %v861_v18 = vadd.f32 %v845_v20, %v765_v10 }
 0x152   : > { %v887_v25 = vadd.f32 %v1539_v48, %v875_v24 }
 0x153   : > { %v873_v26 = vmul.f32 %v1534_v38, %v861_v18 }
 0x154   : > { %v895_v28 = vmax.f32 %v887_v25, 0.0 }
 0x155   : > { %v885_v31 = vadd.f32 %v1539_v48, %v873_v26  ;;  %v854_v41 = vpop.f32.mrf.mxu3 }
 0x156   : > { %903 = vst.msk [vmem:[%s1548_s7 + $0x30] sm:$0xff] %vm605_vm4, %v895_v28  ;;  %v864_v29 = vadd.f32 %v854_v41, %v774_v27  ;;  %v717_v8 = vpop.f32.mrf.mxu0  ;;  %v848_v35 = vpop.f32.mrf.mxu2 }
 0x157   : > { %v893_v33 = vmax.f32 %v885_v31, 0.0  ;;  %v768_v34 = vadd.f32 %v767_v32, %v717_v8 }
 0x158   : > { %v876_v36 = vmul.f32 %v1534_v38, %v864_v29 }
 0x159   : > { %901 = vst.msk [vmem:[%s1548_s7 + $0x20] sm:$0xff] %vm605_vm4, %v893_v33  ;;  %v862_v7 = vadd.f32 %v848_v35, %v768_v34 }
 0x15a   : > { %v888_v39 = vadd.f32 %v1539_v48, %v876_v36 }
 0x15b   : > { %v874_v40 = vmul.f32 %v1534_v38, %v862_v7 }
 0x15c   : > { %v896_v43 = vmax.f32 %v888_v39, 0.0 }
 0x15d   : > { %v886_v37 = vadd.f32 %v1539_v48, %v874_v40 }
 0x15e   : > { %904 = vst.msk [vmem:[%s1548_s7 + $0x38] sm:$0xff] %vm605_vm4, %v896_v43 }
 0x15f   : > { %v894_v44 = vmax.f32 %v886_v37, 0.0 }
 0x161   : > { %902 = vst.msk [vmem:[%s1548_s7 + $0x28] sm:$0xff] %vm605_vm4, %v894_v44 }
 0x162 PF: > { %s16_s25 = sadd.s32 1, %s1205_s25   ;;  %s1603_s21 = smov %s1197_s23 }
 0x163   : > { %p13_p12 = scmp.ge.s32.totalorder %s16_s25, 10   ;;  %s1604_s22 = smov %s1201_s24 }
 0x164   : > { %s1605_s23 = smov %s1608_s26  ;;  %s1606_s24 = smov %s1612_s27 }
 0x165   :  { %15 = sbr.rel (!%p13_p12) target bundleno = 3 (0x3), region = 82 }

</bundles_post_ra>
